<compile_context>
chip_gen: v7x
topology: tpu7x:2x2x1
jax: 0.10.0
libtpu: 0.0.40
codegen_flags: <defaults>
</compile_context>

<pallas_src>
import numpy as np
import jax
import jax.numpy as jnp
from jax.experimental import pallas as pl
from jax.experimental.pallas import tpu as pltpu


def _h0_levelset_kernel(x_row_ref, x_col_ref, death_ref):
    tm = x_col_ref.shape[0]
    n = x_row_ref.shape[1]
    pos_inf = jnp.float32(jnp.inf)
    neg_inf = jnp.float32(-jnp.inf)

    xj = jnp.broadcast_to(x_row_ref[...], (tm, n))   # xj[r, j] = x[j]
    xi = jnp.broadcast_to(x_col_ref[...], (tm, n))   # xi[r, j] = x[i], i = tile_start + r

    col = jax.lax.broadcasted_iota(jnp.int32, (tm, n), 1)
    row = jax.lax.broadcasted_iota(jnp.int32, (tm, n), 0) + pl.program_id(0) * tm

    # a_fwd[r, j] -> min(x[i..j]) for j >= i (else +inf)   via prefix-min scan
    # a_bwd[r, j] -> min(x[j..i]) for j <= i (else +inf)   via suffix-min scan
    a_fwd = jnp.where(col >= row, xj, pos_inf)
    a_bwd = jnp.where(col <= row, xj, pos_inf)

    d = 1
    while d < n:                                     # unrolled: n is static
        sf = pltpu.roll(a_fwd, shift=d, axis=1)      # sf[:, j] = a_fwd[:, j-d] (wraps)
        a_fwd = jnp.minimum(a_fwd, jnp.where(col >= d, sf, pos_inf))
        sb = pltpu.roll(a_bwd, shift=n - d, axis=1)  # sb[:, j] = a_bwd[:, j+d] (wraps)
        a_bwd = jnp.minimum(a_bwd, jnp.where(col < n - d, sb, pos_inf))
        d *= 2

    p = jnp.minimum(a_fwd, a_bwd)                    # path minimum on the line complex

    # Elder rule (super-level sets): death[i] = max_{j: x[j] > x[i]} pathmin(i, j).
    deaths = jnp.max(jnp.where(xj > xi, p, neg_inf), axis=1, keepdims=True)
    death_ref[...] = deaths


def _choose_tm(n_pad):
    # Keep the ~dozen live (tm, n_pad) f32/int32 temporaries well under the
    # scoped-VMEM budget (conservative for v7x's 64 MiB physical VMEM).
    budget = 32 * 1024 * 1024
    per_row = 12 * n_pad * 4
    tm = 256 if n_pad % 256 == 0 else 128
    while tm > 8 and tm * per_row > budget:
        tm //= 2
    return min(tm, n_pad)


def levelset_h0_diagram(img):
    """H0 super-level-set persistence diagram of a 1-D signal; returns (n, 2)."""
    img = jnp.asarray(img, jnp.float32).reshape(-1)
    n = img.shape[0]
    n_pad = ((n + 127) // 128) * 128                 # lane-dense j axis
    x = jnp.full((n_pad,), -jnp.inf, jnp.float32).at[:n].set(img)
    x_row = x.reshape(1, n_pad)
    x_col = x.reshape(n_pad, 1)

    tm = _choose_tm(n_pad)
    grid = (pl.cdiv(n_pad, tm),)

    death = pl.pallas_call(
        _h0_levelset_kernel,
        out_shape=jax.ShapeDtypeStruct((n_pad, 1), jnp.float32),
        grid=grid,
        in_specs=[
            pl.BlockSpec((1, n_pad), lambda i: (0, 0)),   # full signal along lanes
            pl.BlockSpec((tm, 1), lambda i: (i, 0)),      # row tile of x[i]
        ],
        out_specs=pl.BlockSpec((tm, 1), lambda i: (i, 0)),
        compiler_params=pltpu.CompilerParams(
            dimension_semantics=("parallel",),            # 2x on v7x megacore
            vmem_limit_bytes=48 * 1024 * 1024,
        ),
    )(x_row, x_col)

    death = death[:n, 0]
    return jnp.stack([img, death], axis=1)           # (n, 2): [birth, death]


class LevelSetLayer1D:
    """Level-set persistence layer (H0 only) for a 1-D signal on a line complex.

    Mirrors topologylayer's LevelSetLayer1D.forward:  img -> ((dgm,), False),
    where `False` flags a super-level-set filtration.
    """

    def __init__(self, size):
        self.size = size
        # init_line_complex(size): vertices 0..size-1 plus edges (i, i+1).
        # The complex is implicit in the kernel's path-minimum computation.

    def __call__(self, img):
        dgm = levelset_h0_diagram(img)
        return ((dgm,), False)


# ---------------------------------------------------------------------------
# Pure-Python union-find reference (standard 1-D persistence algorithm), used
# only to validate the kernel in __main__.
# ---------------------------------------------------------------------------
def _ref_h0_superlevel(x):
    x = [float(v) for v in x]
    n = len(x)
    order = sorted(range(n), key=lambda i: (x[i], -i), reverse=True)
    parent = {}
    birth_vertex = {}
    death = [None] * n

    def find(v):
        while parent[v] != v:
            parent[v] = parent[parent[v]]
            v = parent[v]
        return v

    for v in order:
        parent[v] = v
        birth_vertex[v] = v
        for u in (v - 1, v + 1):
            if 0 <= u < n and u in parent:
                ru, rv = find(u), find(v)
                if ru == rv:
                    continue
                bu, bv = birth_vertex[ru], birth_vertex[rv]
                if x[bu] >= x[bv]:            # elder rule: higher birth survives
                    death[bv] = x[v]          # edge value = min endpoint = x[v]
                    parent[rv] = ru
                else:
                    death[bu] = x[v]
                    parent[ru] = rv
    return np.array(
        [[x[i], (-np.inf if death[i] is None else death[i])] for i in range(n)],
        dtype=np.float32,
    )


if __name__ == "__main__":
    key = jax.random.PRNGKey(0)

    # Small case matching the module's intended use.
    size = 32
    img = jax.random.normal(key, (size,), dtype=jnp.float32)
    layer = LevelSetLayer1D(size)
    dgms, issublevel = layer(img)
    dgm = jax.block_until_ready(dgms[0])
    assert dgm.shape == (size, 2)
    assert issublevel is False
    ref = _ref_h0_superlevel(np.asarray(img))
    assert np.allclose(np.asarray(dgm), ref, rtol=1e-6, atol=1e-6), (
        np.asarray(dgm), ref)

    # Larger case exercising lane padding (300 -> 384) and a multi-tile grid.
    size2 = 300
    img2 = jax.random.normal(jax.random.PRNGKey(1), (size2,), dtype=jnp.float32)
    dgm2 = jax.block_until_ready(levelset_h0_diagram(img2))
    ref2 = _ref_h0_superlevel(np.asarray(img2))
    assert dgm2.shape == (size2, 2)
    assert np.allclose(np.asarray(dgm2), ref2, rtol=1e-6, atol=1e-6)

    print("KERNEL_OK")
</pallas_src>

<mosaic_0001>
module attributes {stable_mosaic.version = 11 : i64} {
  func.func @_h0_levelset_kernel(%arg0: i32, %arg1: memref<1x128xf32, #tpu.memory_space<vmem>>, %arg2: memref<128x1xf32, #tpu.memory_space<vmem>>, %arg3: memref<128x1xf32, #tpu.memory_space<vmem>>) attributes {dimension_semantics = [#tpu.dimension_semantics<parallel>], iteration_bounds = array<i64: 1>, scalar_prefetch = 0 : i64, scratch_operands = 0 : i64, tpu.core_type = #tpu.core_type<tc>, window_params = [{pipeline_mode = #tpu.pipeline_mode<synchronous>, transform_indices = @transform_0, window_bounds = array<i64: 1, 128>}, {transform_indices = @transform_1, window_bounds = array<i64: 128, 1>}, {transform_indices = @transform_2, window_bounds = array<i64: 128, 1>}]} {
    %c0 = arith.constant 0 : index
    %c0_0 = arith.constant 0 : index
    %0 = vector.load %arg1[%c0, %c0_0] : memref<1x128xf32, #tpu.memory_space<vmem>>, vector<1x128xf32>
    %1 = vector.shape_cast %0 : vector<1x128xf32> to vector<1x128xf32>
    %2 = vector.broadcast %1 : vector<1x128xf32> to vector<128x128xf32>
    %c0_1 = arith.constant 0 : index
    %c0_2 = arith.constant 0 : index
    %3 = vector.load %arg2[%c0_1, %c0_2] : memref<128x1xf32, #tpu.memory_space<vmem>>, vector<128x1xf32>
    %4 = vector.shape_cast %3 : vector<128x1xf32> to vector<128x1xf32>
    %5 = vector.broadcast %4 : vector<128x1xf32> to vector<128x128xf32>
    %6 = tpu.iota {dimensions = array<i32: 1>} : vector<128x128xi32>
    %7 = tpu.iota {dimensions = array<i32: 0>} : vector<128x128xi32>
    %c128_i32 = arith.constant 128 : i32
    %8 = arith.muli %arg0, %c128_i32 : i32
    %9 = vector.broadcast %8 : i32 to vector<128x128xi32>
    %10 = arith.addi %7, %9 : vector<128x128xi32>
    %11 = arith.cmpi sge, %6, %10 : vector<128x128xi32>
    %cst = arith.constant 0x7F800000 : f32
    %12 = vector.broadcast %cst : f32 to vector<128x128xf32>
    %13 = arith.select %11, %2, %12 : vector<128x128xi1>, vector<128x128xf32>
    %14 = arith.cmpi sle, %6, %10 : vector<128x128xi32>
    %cst_3 = arith.constant 0x7F800000 : f32
    %15 = vector.broadcast %cst_3 : f32 to vector<128x128xf32>
    %16 = arith.select %14, %2, %15 : vector<128x128xi1>, vector<128x128xf32>
    %c1_i32 = arith.constant 1 : i32
    %17 = tpu.dynamic_rotate %13 by %c1_i32 dim 1 : vector<128x128xf32>, i32 -> vector<128x128xf32>
    %c1_i32_4 = arith.constant 1 : i32
    %18 = vector.broadcast %c1_i32_4 : i32 to vector<128x128xi32>
    %19 = arith.cmpi sge, %6, %18 : vector<128x128xi32>
    %cst_5 = arith.constant 0x7F800000 : f32
    %20 = vector.broadcast %cst_5 : f32 to vector<128x128xf32>
    %21 = arith.select %19, %17, %20 : vector<128x128xi1>, vector<128x128xf32>
    %22 = arith.minimumf %13, %21 : vector<128x128xf32>
    %c127_i32 = arith.constant 127 : i32
    %23 = tpu.dynamic_rotate %16 by %c127_i32 dim 1 : vector<128x128xf32>, i32 -> vector<128x128xf32>
    %c127_i32_6 = arith.constant 127 : i32
    %24 = vector.broadcast %c127_i32_6 : i32 to vector<128x128xi32>
    %25 = arith.cmpi slt, %6, %24 : vector<128x128xi32>
    %cst_7 = arith.constant 0x7F800000 : f32
    %26 = vector.broadcast %cst_7 : f32 to vector<128x128xf32>
    %27 = arith.select %25, %23, %26 : vector<128x128xi1>, vector<128x128xf32>
    %28 = arith.minimumf %16, %27 : vector<128x128xf32>
    %c2_i32 = arith.constant 2 : i32
    %29 = tpu.dynamic_rotate %22 by %c2_i32 dim 1 : vector<128x128xf32>, i32 -> vector<128x128xf32>
    %c2_i32_8 = arith.constant 2 : i32
    %30 = vector.broadcast %c2_i32_8 : i32 to vector<128x128xi32>
    %31 = arith.cmpi sge, %6, %30 : vector<128x128xi32>
    %cst_9 = arith.constant 0x7F800000 : f32
    %32 = vector.broadcast %cst_9 : f32 to vector<128x128xf32>
    %33 = arith.select %31, %29, %32 : vector<128x128xi1>, vector<128x128xf32>
    %34 = arith.minimumf %22, %33 : vector<128x128xf32>
    %c126_i32 = arith.constant 126 : i32
    %35 = tpu.dynamic_rotate %28 by %c126_i32 dim 1 : vector<128x128xf32>, i32 -> vector<128x128xf32>
    %c126_i32_10 = arith.constant 126 : i32
    %36 = vector.broadcast %c126_i32_10 : i32 to vector<128x128xi32>
    %37 = arith.cmpi slt, %6, %36 : vector<128x128xi32>
    %cst_11 = arith.constant 0x7F800000 : f32
    %38 = vector.broadcast %cst_11 : f32 to vector<128x128xf32>
    %39 = arith.select %37, %35, %38 : vector<128x128xi1>, vector<128x128xf32>
    %40 = arith.minimumf %28, %39 : vector<128x128xf32>
    %c4_i32 = arith.constant 4 : i32
    %41 = tpu.dynamic_rotate %34 by %c4_i32 dim 1 : vector<128x128xf32>, i32 -> vector<128x128xf32>
    %c4_i32_12 = arith.constant 4 : i32
    %42 = vector.broadcast %c4_i32_12 : i32 to vector<128x128xi32>
    %43 = arith.cmpi sge, %6, %42 : vector<128x128xi32>
    %cst_13 = arith.constant 0x7F800000 : f32
    %44 = vector.broadcast %cst_13 : f32 to vector<128x128xf32>
    %45 = arith.select %43, %41, %44 : vector<128x128xi1>, vector<128x128xf32>
    %46 = arith.minimumf %34, %45 : vector<128x128xf32>
    %c124_i32 = arith.constant 124 : i32
    %47 = tpu.dynamic_rotate %40 by %c124_i32 dim 1 : vector<128x128xf32>, i32 -> vector<128x128xf32>
    %c124_i32_14 = arith.constant 124 : i32
    %48 = vector.broadcast %c124_i32_14 : i32 to vector<128x128xi32>
    %49 = arith.cmpi slt, %6, %48 : vector<128x128xi32>
    %cst_15 = arith.constant 0x7F800000 : f32
    %50 = vector.broadcast %cst_15 : f32 to vector<128x128xf32>
    %51 = arith.select %49, %47, %50 : vector<128x128xi1>, vector<128x128xf32>
    %52 = arith.minimumf %40, %51 : vector<128x128xf32>
    %c8_i32 = arith.constant 8 : i32
    %53 = tpu.dynamic_rotate %46 by %c8_i32 dim 1 : vector<128x128xf32>, i32 -> vector<128x128xf32>
    %c8_i32_16 = arith.constant 8 : i32
    %54 = vector.broadcast %c8_i32_16 : i32 to vector<128x128xi32>
    %55 = arith.cmpi sge, %6, %54 : vector<128x128xi32>
    %cst_17 = arith.constant 0x7F800000 : f32
    %56 = vector.broadcast %cst_17 : f32 to vector<128x128xf32>
    %57 = arith.select %55, %53, %56 : vector<128x128xi1>, vector<128x128xf32>
    %58 = arith.minimumf %46, %57 : vector<128x128xf32>
    %c120_i32 = arith.constant 120 : i32
    %59 = tpu.dynamic_rotate %52 by %c120_i32 dim 1 : vector<128x128xf32>, i32 -> vector<128x128xf32>
    %c120_i32_18 = arith.constant 120 : i32
    %60 = vector.broadcast %c120_i32_18 : i32 to vector<128x128xi32>
    %61 = arith.cmpi slt, %6, %60 : vector<128x128xi32>
    %cst_19 = arith.constant 0x7F800000 : f32
    %62 = vector.broadcast %cst_19 : f32 to vector<128x128xf32>
    %63 = arith.select %61, %59, %62 : vector<128x128xi1>, vector<128x128xf32>
    %64 = arith.minimumf %52, %63 : vector<128x128xf32>
    %c16_i32 = arith.constant 16 : i32
    %65 = tpu.dynamic_rotate %58 by %c16_i32 dim 1 : vector<128x128xf32>, i32 -> vector<128x128xf32>
    %c16_i32_20 = arith.constant 16 : i32
    %66 = vector.broadcast %c16_i32_20 : i32 to vector<128x128xi32>
    %67 = arith.cmpi sge, %6, %66 : vector<128x128xi32>
    %cst_21 = arith.constant 0x7F800000 : f32
    %68 = vector.broadcast %cst_21 : f32 to vector<128x128xf32>
    %69 = arith.select %67, %65, %68 : vector<128x128xi1>, vector<128x128xf32>
    %70 = arith.minimumf %58, %69 : vector<128x128xf32>
    %c112_i32 = arith.constant 112 : i32
    %71 = tpu.dynamic_rotate %64 by %c112_i32 dim 1 : vector<128x128xf32>, i32 -> vector<128x128xf32>
    %c112_i32_22 = arith.constant 112 : i32
    %72 = vector.broadcast %c112_i32_22 : i32 to vector<128x128xi32>
    %73 = arith.cmpi slt, %6, %72 : vector<128x128xi32>
    %cst_23 = arith.constant 0x7F800000 : f32
    %74 = vector.broadcast %cst_23 : f32 to vector<128x128xf32>
    %75 = arith.select %73, %71, %74 : vector<128x128xi1>, vector<128x128xf32>
    %76 = arith.minimumf %64, %75 : vector<128x128xf32>
    %c32_i32 = arith.constant 32 : i32
    %77 = tpu.dynamic_rotate %70 by %c32_i32 dim 1 : vector<128x128xf32>, i32 -> vector<128x128xf32>
    %c32_i32_24 = arith.constant 32 : i32
    %78 = vector.broadcast %c32_i32_24 : i32 to vector<128x128xi32>
    %79 = arith.cmpi sge, %6, %78 : vector<128x128xi32>
    %cst_25 = arith.constant 0x7F800000 : f32
    %80 = vector.broadcast %cst_25 : f32 to vector<128x128xf32>
    %81 = arith.select %79, %77, %80 : vector<128x128xi1>, vector<128x128xf32>
    %82 = arith.minimumf %70, %81 : vector<128x128xf32>
    %c96_i32 = arith.constant 96 : i32
    %83 = tpu.dynamic_rotate %76 by %c96_i32 dim 1 : vector<128x128xf32>, i32 -> vector<128x128xf32>
    %c96_i32_26 = arith.constant 96 : i32
    %84 = vector.broadcast %c96_i32_26 : i32 to vector<128x128xi32>
    %85 = arith.cmpi slt, %6, %84 : vector<128x128xi32>
    %cst_27 = arith.constant 0x7F800000 : f32
    %86 = vector.broadcast %cst_27 : f32 to vector<128x128xf32>
    %87 = arith.select %85, %83, %86 : vector<128x128xi1>, vector<128x128xf32>
    %88 = arith.minimumf %76, %87 : vector<128x128xf32>
    %c64_i32 = arith.constant 64 : i32
    %89 = tpu.dynamic_rotate %82 by %c64_i32 dim 1 : vector<128x128xf32>, i32 -> vector<128x128xf32>
    %c64_i32_28 = arith.constant 64 : i32
    %90 = vector.broadcast %c64_i32_28 : i32 to vector<128x128xi32>
    %91 = arith.cmpi sge, %6, %90 : vector<128x128xi32>
    %cst_29 = arith.constant 0x7F800000 : f32
    %92 = vector.broadcast %cst_29 : f32 to vector<128x128xf32>
    %93 = arith.select %91, %89, %92 : vector<128x128xi1>, vector<128x128xf32>
    %94 = arith.minimumf %82, %93 : vector<128x128xf32>
    %c64_i32_30 = arith.constant 64 : i32
    %95 = tpu.dynamic_rotate %88 by %c64_i32_30 dim 1 : vector<128x128xf32>, i32 -> vector<128x128xf32>
    %c64_i32_31 = arith.constant 64 : i32
    %96 = vector.broadcast %c64_i32_31 : i32 to vector<128x128xi32>
    %97 = arith.cmpi slt, %6, %96 : vector<128x128xi32>
    %cst_32 = arith.constant 0x7F800000 : f32
    %98 = vector.broadcast %cst_32 : f32 to vector<128x128xf32>
    %99 = arith.select %97, %95, %98 : vector<128x128xi1>, vector<128x128xf32>
    %100 = arith.minimumf %88, %99 : vector<128x128xf32>
    %101 = arith.minimumf %94, %100 : vector<128x128xf32>
    %102 = arith.cmpf ogt, %2, %5 : vector<128x128xf32>
    %cst_33 = arith.constant 0xFF800000 : f32
    %103 = vector.broadcast %cst_33 : f32 to vector<128x128xf32>
    %104 = arith.select %102, %101, %103 : vector<128x128xi1>, vector<128x128xf32>
    %cst_34 = arith.constant dense<0xFF800000> : vector<128xf32>
    %105 = vector.multi_reduction <maximumf>, %104, %cst_34 [1] : vector<128x128xf32> to vector<128xf32>
    %106 = vector.shape_cast %105 : vector<128xf32> to vector<128x1xf32>
    %c0_35 = arith.constant 0 : index
    %c0_36 = arith.constant 0 : index
    %107 = vector.load %arg3[%c0_35, %c0_36] : memref<128x1xf32, #tpu.memory_space<vmem>>, vector<128x1xf32>
    tpu.vector_store %arg3[%c0_35, %c0_36], %106 {strides = array<i32>} : memref<128x1xf32, #tpu.memory_space<vmem>>, vector<128x1xf32>,
    return
  }
  func.func @transform_0(%arg0: i32) -> (i32, i32) {
    %c0_i32 = arith.constant 0 : i32
    %c0_i32_0 = arith.constant 0 : i32
    %c0_i32_1 = arith.constant 0 : i32
    return %c0_i32, %c0_i32_0 : i32, i32
  }
  func.func @transform_1(%arg0: i32) -> (i32, i32) {
    %c0_i32 = arith.constant 0 : i32
    %c0_i32_0 = arith.constant 0 : i32
    return %arg0, %c0_i32 : i32, i32
  }
  func.func @transform_2(%arg0: i32) -> (i32, i32) {
    %c0_i32 = arith.constant 0 : i32
    %c0_i32_0 = arith.constant 0 : i32
    return %arg0, %c0_i32 : i32, i32
  }
}

</mosaic_0001>

<bundles_post_ra>
// kernel: tpu_custom_call.1
= control target key start
LH: loop header
LB: loop body
LE: loop exit
PB: predicated region body
PF: predicated region fallthrough
CT: control target
= control target key end

     0   :  { %v1244_v0 = vmov 0   ;;  %v114_v9 = vlaneseq  ;;  %s1245_s11 = smov 1   ;;  %s1246_s12 = smov 127   ;;  %s3194_s1 = inlined_call_operand.vmem [shape: f32[128,1], index: 1, kind: input, shape index: {}]   ;;  %s3195_s0 = inlined_call_operand.vmem [shape: f32[1,128], index: 0, kind: input, shape index: {}]   ;;  %s3196_s2 = inlined_call_operand.vmem [shape: f32[128,1], index: 2, kind: output, shape index: {}]  }
   0x1   :  { %1242 = vset.pattern.permute.xlu1 %v1244_v0  ;;  %1241 = vset.pattern.permute.xlu0 %v1244_v0  ;;  %v20_v1 = vld [vmem:[%s3194_s1 + $0x10] sm:$0xff]  ;;  %v18_v2 = vld [vmem:[%s3194_s1] sm:$0xff]  ;;  %v21_v3 = vld [vmem:[%s3194_s1 + $0x18] sm:$0xff]  ;;  %s1247_s13 = smov 2   ;;  %s1248_s14 = smov 126  }
   0x2   :  { %46 = vperm.xlu1 %1242, %v20_v1   ;;  %36 = vperm.xlu0 %1241, %v18_v2   ;;  %v19_v4 = vld [vmem:[%s3194_s1 + $0x8] sm:$0xff]  ;;  %v22_v6 = vld [vmem:[%s3194_s1 + $0x20] sm:$0xff]  ;;  %v25_v7 = vld [vmem:[%s3194_s1 + $0x38] sm:$0xff]  ;;  %v1303_v12 = vshrl.u32 %v114_v9, 7  ;;  %v1311_v15 = vand.u32 127, %v114_v9  ;;  %s1249_s19 = smov 4  }
   0x3   :  { %v23_v5 = vld [vmem:[%s3194_s1 + $0x28] sm:$0xff]  ;;  %v24_v8 = vld [vmem:[%s3194_s1 + $0x30] sm:$0xff]  ;;  %v26_v11 = vld [vmem:[%s3194_s1 + $0x40] sm:$0xff]  ;;  %s1251_s20 = smov 8   ;;  %s1252_s21 = smov 120  }
   0x4   :  { %v27_v10 = vld [vmem:[%s3194_s1 + $0x48] sm:$0xff]  ;;  %v29_v13 = vld [vmem:[%s3194_s1 + $0x58] sm:$0xff]  ;;  %v28_v14 = vld [vmem:[%s3194_s1 + $0x50] sm:$0xff]  ;;  %v1314_v16 = vadd.s32 8, %v1303_v12  ;;  %vm151_vm1 = vcmp.ge.s32.totalorder %v1311_v15, %v1303_v12  ;;  %v1332_v20 = vadd.s32 24, %v1303_v12  ;;  %v1335_v21 = vadd.s32 16, %v1303_v12 }
   0x5   :  { %v31_v17 = vld [vmem:[%s3194_s1 + $0x68] sm:$0xff]  ;;  %v30_v18 = vld [vmem:[%s3194_s1 + $0x60] sm:$0xff]  ;;  %v1348_v24 = vadd.s32 40, %v1303_v12  ;;  %v1351_v25 = vadd.s32 32, %v1303_v12  ;;  %v1368_v28 = vadd.s32 56, %v1303_v12  ;;  %v1371_v29 = vadd.s32 48, %v1303_v12 }
   0x6   :  { %51 = vperm.xlu1 %1242, %v21_v3   ;;  %41 = vperm.xlu0 %1241, %v19_v4   ;;  %v1325_v19 = vld [vmem:[%s3195_s0] ss:$0 sm:$0xff]  ;;  %vm152_vm0 = vcmp.ge.s32.totalorder %v1311_v15, %v1314_v16  ;;  %vm154_vm2 = vcmp.ge.s32.totalorder %v1311_v15, %v1332_v20  ;;  %vm153_vm3 = vcmp.ge.s32.totalorder %v1311_v15, %v1335_v21  ;;  %v1388_v32 = vadd.s32 72, %v1303_v12  ;;  %s1253_s22 = smov 16   ;;  %s1254_s23 = smov 112  }
   0x7   :  { %v1338_v22 = vsel %vm152_vm0, %v1325_v19, inf  ;;  %v1341_v23 = vsel %vm151_vm1, %v1325_v19, inf  ;;  %v1358_v26 = vsel %vm154_vm2, %v1325_v19, inf  ;;  %v1361_v27 = vsel %vm153_vm3, %v1325_v19, inf  ;;  %s1255_s24 = smov 32   ;;  %s1256_s25 = smov 96  }
   0x8   :  { %vm156_vm4 = vcmp.ge.s32.totalorder %v1311_v15, %v1348_v24  ;;  %vm155_vm5 = vcmp.ge.s32.totalorder %v1311_v15, %v1351_v25  ;;  %vm158_vm6 = vcmp.ge.s32.totalorder %v1311_v15, %v1368_v28  ;;  %vm157_vm7 = vcmp.ge.s32.totalorder %v1311_v15, %v1371_v29  ;;  %s1257_s26 = smov 64  }
   0x9   :  { %v1378_v30 = vsel %vm156_vm4, %v1325_v19, inf  ;;  %v1381_v31 = vsel %vm155_vm5, %v1325_v19, inf  ;;  %v1391_v33 = vadd.s32 64, %v1303_v12  ;;  %v1398_v34 = vsel %vm158_vm6, %v1325_v19, inf }
   0xa   :  { %61 = vperm.xlu1 %1242, %v23_v5   ;;  %56 = vperm.xlu0 %1241, %v22_v6   ;;  %v1401_v35 = vsel %vm157_vm7, %v1325_v19, inf  ;;  %vm160_vm8 = vcmp.ge.s32.totalorder %v1311_v15, %v1388_v32  ;;  %v1408_v36 = vadd.s32 88, %v1303_v12  ;;  %v1411_v37 = vadd.s32 80, %v1303_v12 }
   0xb   :  { %vm159_vm9 = vcmp.ge.s32.totalorder %v1311_v15, %v1391_v33  ;;  %v1418_v38 = vsel %vm160_vm8, %v1325_v19, inf  ;;  %v130_v40 = vadd.s32 104, %v1303_v12  ;;  %v129_v41 = vadd.s32 96, %v1303_v12 }
   0xc   :  { %v1421_v39 = vsel %vm159_vm9, %v1325_v19, inf  ;;  %vm162_vm10 = vcmp.ge.s32.totalorder %v1311_v15, %v1408_v36  ;;  %vm161_vm11 = vcmp.ge.s32.totalorder %v1311_v15, %v1411_v37  ;;  %v132_v44 = vadd.s32 120, %v1303_v12 }
   0xd   :  { %v1434_v42 = vsel %vm162_vm10, %v1325_v19, inf  ;;  %v1437_v43 = vsel %vm161_vm11, %v1325_v19, inf  ;;  %vm164_vm12 = vcmp.ge.s32.totalorder %v1311_v15, %v130_v40  ;;  %vm163_vm13 = vcmp.ge.s32.totalorder %v1311_v15, %v129_v41 }
   0xe   :  { %71 = vperm.xlu1 %1242, %v25_v7   ;;  %66 = vperm.xlu0 %1241, %v24_v8   ;;  %v131_v45 = vadd.s32 112, %v1303_v12  ;;  %v1448_v46 = vsel %vm164_vm12, %v1325_v19, inf  ;;  %v1451_v47 = vsel %vm163_vm13, %v1325_v19, inf  ;;  %vm166_vm14 = vcmp.ge.s32.totalorder %v1311_v15, %v132_v44 }
   0xf   :  { %v1460_v48 = vsel %vm166_vm14, %v1325_v19, inf  ;;  %vm184_vm0 = vcmp.le.s32.totalorder %v1311_v15, %v1314_v16  ;;  %vm183_vm1 = vcmp.le.s32.totalorder %v1311_v15, %v1303_v12  ;;  %vm186_vm2 = vcmp.le.s32.totalorder %v1311_v15, %v1332_v20 }
  0x10   :  { %vm165_vm15 = vcmp.ge.s32.totalorder %v1311_v15, %v131_v45  ;;  %v1474_v50 = vsel %vm184_vm0, %v1325_v19, inf  ;;  %v1477_v51 = vsel %vm183_vm1, %v1325_v19, inf  ;;  %vm185_vm3 = vcmp.le.s32.totalorder %v1311_v15, %v1335_v21 }
  0x11   :  { %v1463_v49 = vsel %vm165_vm15, %v1325_v19, inf  ;;  %v1488_v52 = vsel %vm186_vm2, %v1325_v19, inf  ;;  %v1491_v53 = vsel %vm185_vm3, %v1325_v19, inf  ;;  %vm188_vm4 = vcmp.le.s32.totalorder %v1311_v15, %v1348_v24 }
  0x12   :  { %81 = vperm.xlu1 %1242, %v27_v10   ;;  %76 = vperm.xlu0 %1241, %v26_v11   ;;  %vm187_vm5 = vcmp.le.s32.totalorder %v1311_v15, %v1351_v25  ;;  %v1502_v54 = vsel %vm188_vm4, %v1325_v19, inf  ;;  %vm190_vm6 = vcmp.le.s32.totalorder %v1311_v15, %v1368_v28  ;;  %vm189_vm7 = vcmp.le.s32.totalorder %v1311_v15, %v1371_v29 }
  0x13   :  { %v1505_v55 = vsel %vm187_vm5, %v1325_v19, inf  ;;  %v1516_v56 = vsel %vm190_vm6, %v1325_v19, inf  ;;  %v1519_v57 = vsel %vm189_vm7, %v1325_v19, inf  ;;  %vm192_vm8 = vcmp.le.s32.totalorder %v1311_v15, %v1388_v32 }
  0x14   :  { %vm191_vm9 = vcmp.le.s32.totalorder %v1311_v15, %v1391_v33  ;;  %v1530_v58 = vsel %vm192_vm8, %v1325_v19, inf  ;;  %vm194_vm10 = vcmp.le.s32.totalorder %v1311_v15, %v1408_v36  ;;  %vm193_vm11 = vcmp.le.s32.totalorder %v1311_v15, %v1411_v37 }
  0x15   :  { %v1533_v59 = vsel %vm191_vm9, %v1325_v19, inf  ;;  %v1544_v60 = vsel %vm194_vm10, %v1325_v19, inf  ;;  %v1547_v61 = vsel %vm193_vm11, %v1325_v19, inf  ;;  %vm196_vm12 = vcmp.le.s32.totalorder %v1311_v15, %v130_v40 }
  0x16   :  { %91 = vperm.xlu1 %1242, %v29_v13   ;;  %86 = vperm.xlu0 %1241, %v28_v14   ;;  %vm195_vm13 = vcmp.le.s32.totalorder %v1311_v15, %v129_v41  ;;  %v1556_v62 = vsel %vm196_vm12, %v1325_v19, inf  ;;  %vm198_vm14 = vcmp.le.s32.totalorder %v1311_v15, %v132_v44  ;;  %vm197_vm15 = vcmp.le.s32.totalorder %v1311_v15, %v131_v45 }
  0x17   :  { %v1559_v63 = vsel %vm195_vm13, %v1325_v19, inf  ;;  %v1568_v0 = vsel %vm198_vm14, %v1325_v19, inf  ;;  %v1571_v1 = vsel %vm197_vm15, %v1325_v19, inf  ;;  %vm247_vm0 = vcmp.ge.s32.totalorder %v1311_v15, 1 }
  0x18   :  { %vm312_vm1 = vcmp.lt.s32.totalorder %v1311_v15, 127  ;;  %vm377_vm2 = vcmp.ge.s32.totalorder %v1311_v15, 2  ;;  %vm442_vm3 = vcmp.lt.s32.totalorder %v1311_v15, 126  ;;  %vm507_vm4 = vcmp.ge.s32.totalorder %v1311_v15, 4 }
  0x19   :  { %vm572_vm5 = vcmp.lt.s32.totalorder %v1311_v15, 124  ;;  %vm637_vm6 = vcmp.ge.s32.totalorder %v1311_v15, 8  ;;  %vm702_vm7 = vcmp.lt.s32.totalorder %v1311_v15, 120  ;;  %vm767_vm8 = vcmp.ge.s32.totalorder %v1311_v15, 16 }
  0x1a   :  { %101 = vperm.xlu1 %1242, %v31_v17   ;;  %96 = vperm.xlu0 %1241, %v30_v18   ;;  %vm832_vm9 = vcmp.lt.s32.totalorder %v1311_v15, 112  ;;  %vm897_vm10 = vcmp.ge.s32.totalorder %v1311_v15, 32  ;;  %vm962_vm11 = vcmp.lt.s32.totalorder %v1311_v15, 96  ;;  %vm1027_vm12 = vcmp.ge.s32.totalorder %v1311_v15, 64 }
  0x1b   :  { %vm1092_vm13 = vcmp.lt.s32.totalorder %v1311_v15, 64 }
  0x1e   :  { %217 = vrot.lane.b32.xlu1 %v1338_v22, %s1245_s11  ;;  %215 = vrot.lane.b32.xlu0 %v1341_v23, %s1245_s11 }
  0x22   :  { %221 = vrot.lane.b32.xlu1 %v1358_v26, %s1245_s11  ;;  %219 = vrot.lane.b32.xlu0 %v1361_v27, %s1245_s11 }
  0x26   :  { %225 = vrot.lane.b32.xlu1 %v1378_v30, %s1245_s11  ;;  %223 = vrot.lane.b32.xlu0 %v1381_v31, %s1245_s11 }
  0x2a   :  { %229 = vrot.lane.b32.xlu1 %v1398_v34, %s1245_s11  ;;  %227 = vrot.lane.b32.xlu0 %v1401_v35, %s1245_s11 }
  0x2e   :  { %233 = vrot.lane.b32.xlu1 %v1418_v38, %s1245_s11  ;;  %231 = vrot.lane.b32.xlu0 %v1421_v39, %s1245_s11 }
  0x32   :  { %237 = vrot.lane.b32.xlu1 %v1434_v42, %s1245_s11  ;;  %235 = vrot.lane.b32.xlu0 %v1437_v43, %s1245_s11 }
  0x36   :  { %241 = vrot.lane.b32.xlu1 %v1448_v46, %s1245_s11  ;;  %239 = vrot.lane.b32.xlu0 %v1451_v47, %s1245_s11 }
  0x3a   :  { %245 = vrot.lane.b32.xlu1 %v1460_v48, %s1245_s11  ;;  %243 = vrot.lane.b32.xlu0 %v1463_v49, %s1245_s11 }
  0x3e   :  { %282 = vrot.lane.b32.xlu1 %v1474_v50, %s1246_s12  ;;  %280 = vrot.lane.b32.xlu0 %v1477_v51, %s1246_s12 }
  0x42   :  { %286 = vrot.lane.b32.xlu1 %v1488_v52, %s1246_s12  ;;  %284 = vrot.lane.b32.xlu0 %v1491_v53, %s1246_s12 }
  0x46   :  { %290 = vrot.lane.b32.xlu1 %v1502_v54, %s1246_s12  ;;  %288 = vrot.lane.b32.xlu0 %v1505_v55, %s1246_s12 }
  0x4a   :  { %294 = vrot.lane.b32.xlu1 %v1516_v56, %s1246_s12  ;;  %292 = vrot.lane.b32.xlu0 %v1519_v57, %s1246_s12 }
  0x4e   :  { %298 = vrot.lane.b32.xlu1 %v1530_v58, %s1246_s12  ;;  %296 = vrot.lane.b32.xlu0 %v1533_v59, %s1246_s12 }
  0x52   :  { %302 = vrot.lane.b32.xlu1 %v1544_v60, %s1246_s12  ;;  %300 = vrot.lane.b32.xlu0 %v1547_v61, %s1246_s12 }
  0x56   :  { %306 = vrot.lane.b32.xlu1 %v1556_v62, %s1246_s12  ;;  %304 = vrot.lane.b32.xlu0 %v1559_v63, %s1246_s12 }
  0x5a   :  { %310 = vrot.lane.b32.xlu1 %v1568_v0, %s1246_s12  ;;  %308 = vrot.lane.b32.xlu0 %v1571_v1, %s1246_s12 }
  0x81   :  { %v1577_v2 = vpop.permute.xlu1 %46  ;;  %v1579_v3 = vpop.permute.xlu0 %36 }
  0x85   :  { %v1581_v4 = vpop.permute.xlu1 %51  ;;  %v1583_v5 = vpop.permute.xlu0 %41 }
  0x89   :  { %v1585_v6 = vpop.permute.xlu1 %61  ;;  %v1587_v7 = vpop.permute.xlu0 %56 }
  0x8d   :  { %v1589_v8 = vpop.permute.xlu1 %71  ;;  %v1591_v9 = vpop.permute.xlu0 %66 }
  0x91   :  { %v1593_v10 = vpop.permute.xlu1 %81  ;;  %v1595_v11 = vpop.permute.xlu0 %76 }
  0x95   :  { %v1597_v12 = vpop.permute.xlu1 %91  ;;  %v1599_v13 = vpop.permute.xlu0 %86 }
  0x99   :  { %v1601_v14 = vpop.permute.xlu1 %101  ;;  %v1603_v16 = vpop.permute.xlu0 %96 }
  0x9a   :  { %3201 = vst [vmem:[#allocation2_spill] sm:$0xff] %v1601_v14 }
  0x9d   :  { %v218_v17 = vpop.permute.xlu1 %217  ;;  %v216_v18 = vpop.permute.xlu0 %215 }
  0x9e   :  { %v249_v19 = vsel %vm247_vm0, %v218_v17, inf  ;;  %v248_v20 = vsel %vm247_vm0, %v216_v18, inf }
  0x9f   :  { %v1611_v21 = vmin.f32 %v1338_v22, %v249_v19  ;;  %v1614_v24 = vmin.f32 %v1341_v23, %v248_v20 }
  0xa1   :  { %347 = vrot.lane.b32.xlu1 %v1611_v21, %s1247_s13  ;;  %v222_v25 = vpop.permute.xlu1 %221  ;;  %345 = vrot.lane.b32.xlu0 %v1614_v24, %s1247_s13  ;;  %v220_v28 = vpop.permute.xlu0 %219 }
  0xa2   :  { %v251_v29 = vsel %vm247_vm0, %v222_v25, inf }
  0xa3   :  { %v1623_v32 = vmin.f32 %v1358_v26, %v251_v29 }
  0xa5   :  { %351 = vrot.lane.b32.xlu1 %v1623_v32, %s1247_s13  ;;  %v226_v22 = vpop.permute.xlu1 %225  ;;  %v224_v23 = vpop.permute.xlu0 %223 }
  0xa6   :  { %v253_v33 = vsel %vm247_vm0, %v226_v22, inf }
  0xa7   :  { %v1630_v36 = vmin.f32 %v1378_v30, %v253_v33 }
  0xa9   :  { %355 = vrot.lane.b32.xlu1 %v1630_v36, %s1247_s13  ;;  %v230_v37 = vpop.permute.xlu1 %229  ;;  %v228_v40 = vpop.permute.xlu0 %227 }
  0xaa   :  { %v255_v26 = vsel %vm247_vm0, %v230_v37, inf }
  0xab   :  { %v1637_v41 = vmin.f32 %v1398_v34, %v255_v26 }
  0xad   :  { %359 = vrot.lane.b32.xlu1 %v1637_v41, %s1247_s13  ;;  %v234_v44 = vpop.permute.xlu1 %233  ;;  %v232_v45 = vpop.permute.xlu0 %231 }
  0xae   :  { %v257_v30 = vsel %vm247_vm0, %v234_v44, inf }
  0xaf   :  { %v1644_v17 = vmin.f32 %v1418_v38, %v257_v30 }
  0xb1   :  { %363 = vrot.lane.b32.xlu1 %v1644_v17, %s1247_s13  ;;  %v238_v18 = vpop.permute.xlu1 %237  ;;  %v236_v19 = vpop.permute.xlu0 %235 }
  0xb2   :  { %v259_v34 = vsel %vm247_vm0, %v238_v18, inf }
  0xb3   :  { %v1651_v20 = vmin.f32 %v1434_v42, %v259_v34 }
  0xb5   :  { %367 = vrot.lane.b32.xlu1 %v1651_v20, %s1247_s13  ;;  %v242_v25 = vpop.permute.xlu1 %241  ;;  %v240_v29 = vpop.permute.xlu0 %239 }
  0xb6   :  { %v261_v38 = vsel %vm247_vm0, %v242_v25, inf }
  0xb7   :  { %v1658_v22 = vmin.f32 %v1448_v46, %v261_v38 }
  0xb9   :  { %371 = vrot.lane.b32.xlu1 %v1658_v22, %s1247_s13  ;;  %v246_v33 = vpop.permute.xlu1 %245  ;;  %v244_v37 = vpop.permute.xlu0 %243 }
  0xba   :  { %v263_v42 = vsel %vm247_vm0, %v246_v33, inf }
  0xbb   :  { %v1665_v26 = vmin.f32 %v1460_v48, %v263_v42  ;;  %v250_v48 = vsel %vm247_vm0, %v220_v28, inf  ;;  %v252_v28 = vsel %vm247_vm0, %v224_v23, inf }
  0xbd   :  { %375 = vrot.lane.b32.xlu1 %v1665_v26, %s1247_s13  ;;  %v283_v44 = vpop.permute.xlu1 %282  ;;  %v281_v30 = vpop.permute.xlu0 %280 }
  0xbe   :  { %v314_v46 = vsel %vm312_vm1, %v283_v44, inf  ;;  %v313_v18 = vsel %vm312_vm1, %v281_v30, inf  ;;  %v1703_v30 = vmin.f32 %v1381_v31, %v252_v28 }
  0xbf   :  { %v1675_v34 = vmin.f32 %v1474_v50, %v314_v46  ;;  %v1678_v25 = vmin.f32 %v1477_v51, %v313_v18  ;;  %v1689_v50 = vmin.f32 %v1361_v27, %v250_v48 }
  0xc1   :  { %412 = vrot.lane.b32.xlu1 %v1675_v34, %s1248_s14  ;;  %v287_v38 = vpop.permute.xlu1 %286  ;;  %410 = vrot.lane.b32.xlu0 %v1678_v25, %s1248_s14 }
  0xc2   :  { %v316_v33 = vsel %vm312_vm1, %v287_v38, inf }
  0xc3   :  { %v1692_v51 = vmin.f32 %v1488_v52, %v316_v33  ;;  %v254_v52 = vsel %vm247_vm0, %v228_v40, inf  ;;  %v256_v40 = vsel %vm247_vm0, %v232_v45, inf  ;;  %v258_v33 = vsel %vm247_vm0, %v236_v19, inf }
  0xc4   :  { %v1717_v18 = vmin.f32 %v1401_v35, %v254_v52  ;;  %v1731_v35 = vmin.f32 %v1421_v39, %v256_v40  ;;  %v1745_v39 = vmin.f32 %v1437_v43, %v258_v33  ;;  %v260_v19 = vsel %vm247_vm0, %v240_v29, inf }
  0xc5   :  { %416 = vrot.lane.b32.xlu1 %v1692_v51, %s1248_s14  ;;  %v291_v42 = vpop.permute.xlu1 %290  ;;  %349 = vrot.lane.b32.xlu0 %v1689_v50, %s1247_s13  ;;  %v262_v29 = vsel %vm247_vm0, %v244_v37, inf }
  0xc6   :  { %v318_v44 = vsel %vm312_vm1, %v291_v42, inf }
  0xc7   :  { %v1706_v27 = vmin.f32 %v1502_v54, %v318_v44  ;;  %v285_v54 = vpop.permute.xlu0 %284 }
  0xc9   :  { %420 = vrot.lane.b32.xlu1 %v1706_v27, %s1248_s14  ;;  %v295_v23 = vpop.permute.xlu1 %294  ;;  %353 = vrot.lane.b32.xlu0 %v1703_v30, %s1247_s13 }
  0xca   :  { %v320_v46 = vsel %vm312_vm1, %v295_v23, inf  ;;  %v1759_v23 = vmin.f32 %v1451_v47, %v260_v19  ;;  %v315_v47 = vsel %vm312_vm1, %v285_v54, inf  ;;  %v33_v54 = vld [vmem:[%s3194_s1 + $0x78] sm:$0xff] }
  0xcb   :  { %v1720_v31 = vmin.f32 %v1516_v56, %v320_v46  ;;  %v289_v28 = vpop.permute.xlu0 %288  ;;  %v1785_v37 = vmin.f32 %v1491_v53, %v315_v47 }
  0xcd   :  { %424 = vrot.lane.b32.xlu1 %v1720_v31, %s1248_s14  ;;  %v299_v48 = vpop.permute.xlu1 %298  ;;  %357 = vrot.lane.b32.xlu0 %v1717_v18, %s1247_s13 }
  0xce   :  { %v322_v38 = vsel %vm312_vm1, %v299_v48, inf }
  0xcf   :  { %v1734_v56 = vmin.f32 %v1530_v58, %v322_v38 }
  0xd1   :  { %428 = vrot.lane.b32.xlu1 %v1734_v56, %s1248_s14  ;;  %v303_v45 = vpop.permute.xlu1 %302  ;;  %361 = vrot.lane.b32.xlu0 %v1731_v35, %s1247_s13 }
  0xd2   :  { %v324_v42 = vsel %vm312_vm1, %v303_v45, inf }
  0xd3   :  { %v1748_v58 = vmin.f32 %v1544_v60, %v324_v42  ;;  %v293_v60 = vpop.permute.xlu0 %292 }
  0xd4   :  { %v319_v33 = vsel %vm312_vm1, %v293_v60, inf }
  0xd5   :  { %432 = vrot.lane.b32.xlu1 %v1748_v58, %s1248_s14  ;;  %v307_v44 = vpop.permute.xlu1 %306  ;;  %365 = vrot.lane.b32.xlu0 %v1745_v39, %s1247_s13  ;;  %v1802_v45 = vmin.f32 %v1519_v57, %v319_v33 }
  0xd6   :  { %v326_v52 = vsel %vm312_vm1, %v307_v44, inf }
  0xd7   :  { %v1762_v43 = vmin.f32 %v1556_v62, %v326_v52  ;;  %v1775_v62 = vmin.f32 %v1463_v49, %v262_v29  ;;  %v297_v38 = vpop.permute.xlu0 %296  ;;  %v317_v49 = vsel %vm312_vm1, %v289_v28, inf }
  0xd8   :  { %v321_v28 = vsel %vm312_vm1, %v297_v38, inf }
  0xd9   :  { %436 = vrot.lane.b32.xlu1 %v1762_v43, %s1248_s14  ;;  %v311_v46 = vpop.permute.xlu1 %310  ;;  %369 = vrot.lane.b32.xlu0 %v1759_v23, %s1247_s13  ;;  %v1809_v42 = vmin.f32 %v1533_v59, %v321_v28 }
  0xda   :  { %v328_v40 = vsel %vm312_vm1, %v311_v46, inf }
  0xdb   :  { %v1778_v48 = vmin.f32 %v1568_v0, %v328_v40  ;;  %v1795_v0 = vmin.f32 %v1505_v55, %v317_v49  ;;  %v301_v53 = vpop.permute.xlu0 %300 }
  0xdc   :  { %v323_v19 = vsel %vm312_vm1, %v301_v53, inf }
  0xdd   :  { %440 = vrot.lane.b32.xlu1 %v1778_v48, %s1248_s14  ;;  %373 = vrot.lane.b32.xlu0 %v1775_v62, %s1247_s13  ;;  %v1816_v44 = vmin.f32 %v1547_v61, %v323_v19  ;;  %v32_v61 = vld [vmem:[%s3194_s1 + $0x70] sm:$0xff]  ;;  %s1250_s1 = smov 124  }
  0xdf   :  { %v305_v55 = vpop.permute.xlu0 %304 }
  0xe0   :  { %v325_v57 = vsel %vm312_vm1, %v305_v55, inf }
  0xe1   :  { %111 = vperm.xlu1 %1242, %v33_v54   ;;  %414 = vrot.lane.b32.xlu0 %v1785_v37, %s1248_s14  ;;  %v1823_v59 = vmin.f32 %v1559_v63, %v325_v57 }
  0xe3   :  { %v309_v52 = vpop.permute.xlu0 %308 }
  0xe4   :  { %v327_v60 = vsel %vm312_vm1, %v309_v52, inf }
  0xe5   :  { %418 = vrot.lane.b32.xlu0 %v1795_v0, %s1248_s14  ;;  %v1830_v29 = vmin.f32 %v1571_v1, %v327_v60 }
  0xe9   :  { %422 = vrot.lane.b32.xlu0 %v1802_v45, %s1248_s14 }
  0xed   :  { %426 = vrot.lane.b32.xlu0 %v1809_v42, %s1248_s14 }
  0xf1   :  { %430 = vrot.lane.b32.xlu0 %v1816_v44, %s1248_s14 }
  0xf5   :  { %434 = vrot.lane.b32.xlu0 %v1823_v59, %s1248_s14 }
  0xf9   :  { %438 = vrot.lane.b32.xlu0 %v1830_v29, %s1248_s14 }
  0xfd   :  { %106 = vperm.xlu0 %1241, %v32_v61  }
 0x113   :  { %v348_v63 = vpop.permute.xlu1 %347  ;;  %v346_v46 = vpop.permute.xlu0 %345 }
 0x114   :  { %v379_v40 = vsel %vm377_vm2, %v348_v63, inf  ;;  %v378_v47 = vsel %vm377_vm2, %v346_v46, inf }
 0x115   :  { %v1843_v1 = vmin.f32 %v1611_v21, %v379_v40  ;;  %v1846_v38 = vmin.f32 %v1614_v24, %v378_v47 }
 0x117   :  { %477 = vrot.lane.b32.xlu1 %v1843_v1, %s1249_s19  ;;  %v352_v54 = vpop.permute.xlu1 %351  ;;  %475 = vrot.lane.b32.xlu0 %v1846_v38, %s1249_s19 }
 0x118   :  { %v381_v49 = vsel %vm377_vm2, %v352_v54, inf }
 0x119   :  { %v1855_v33 = vmin.f32 %v1623_v32, %v381_v49 }
 0x11b   :  { %481 = vrot.lane.b32.xlu1 %v1855_v33, %s1249_s19  ;;  %v356_v21 = vpop.permute.xlu1 %355 }
 0x11c   :  { %v383_v24 = vsel %vm377_vm2, %v356_v21, inf }
 0x11d   :  { %v1862_v53 = vmin.f32 %v1630_v36, %v383_v24 }
 0x11f   :  { %485 = vrot.lane.b32.xlu1 %v1862_v53, %s1249_s19  ;;  %v360_v28 = vpop.permute.xlu1 %359 }
 0x120   :  { %v385_v55 = vsel %vm377_vm2, %v360_v28, inf }
 0x121   :  { %v1869_v32 = vmin.f32 %v1637_v41, %v385_v55 }
 0x123   :  { %489 = vrot.lane.b32.xlu1 %v1869_v32, %s1249_s19  ;;  %v364_v19 = vpop.permute.xlu1 %363 }
 0x124   :  { %v387_v57 = vsel %vm377_vm2, %v364_v19, inf }
 0x125   :  { %v1876_v36 = vmin.f32 %v1644_v17, %v387_v57 }
 0x127   :  { %493 = vrot.lane.b32.xlu1 %v1876_v36, %s1249_s19  ;;  %v368_v52 = vpop.permute.xlu1 %367 }
 0x128   :  { %v389_v60 = vsel %vm377_vm2, %v368_v52, inf }
 0x129   :  { %v1883_v41 = vmin.f32 %v1651_v20, %v389_v60 }
 0x12b   :  { %497 = vrot.lane.b32.xlu1 %v1883_v41, %s1249_s19  ;;  %v372_v61 = vpop.permute.xlu1 %371 }
 0x12c   :  { %v391_v63 = vsel %vm377_vm2, %v372_v61, inf }
 0x12d   :  { %v1890_v17 = vmin.f32 %v1658_v22, %v391_v63 }
 0x12f   :  { %501 = vrot.lane.b32.xlu1 %v1890_v17, %s1249_s19  ;;  %v376_v46 = vpop.permute.xlu1 %375 }
 0x130   :  { %v393_v40 = vsel %vm377_vm2, %v376_v46, inf }
 0x131   :  { %v1897_v20 = vmin.f32 %v1665_v26, %v393_v40 }
 0x133   :  { %505 = vrot.lane.b32.xlu1 %v1897_v20, %s1249_s19  ;;  %v413_v47 = vpop.permute.xlu1 %412  ;;  %v411_v54 = vpop.permute.xlu0 %410 }
 0x134   :  { %v444_v22 = vsel %vm442_vm3, %v413_v47, inf  ;;  %v443_v49 = vsel %vm442_vm3, %v411_v54, inf }
 0x135   :  { %v1907_v21 = vmin.f32 %v1675_v34, %v444_v22  ;;  %v1910_v24 = vmin.f32 %v1678_v25, %v443_v49 }
 0x137   :  { %542 = vrot.lane.b32.xlu1 %v1907_v21, %s1250_s1  ;;  %v417_v26 = vpop.permute.xlu1 %416  ;;  %540 = vrot.lane.b32.xlu0 %v1910_v24, %s1250_s1  ;;  %v350_v28 = vpop.permute.xlu0 %349 }
 0x138   :  { %v446_v55 = vsel %vm442_vm3, %v417_v26, inf  ;;  %v380_v19 = vsel %vm377_vm2, %v350_v28, inf }
 0x139   :  { %v1921_v34 = vmin.f32 %v1692_v51, %v446_v55  ;;  %v1924_v25 = vmin.f32 %v1689_v50, %v380_v19 }
 0x13b   :  { %546 = vrot.lane.b32.xlu1 %v1921_v34, %s1250_s1  ;;  %v421_v57 = vpop.permute.xlu1 %420  ;;  %479 = vrot.lane.b32.xlu0 %v1924_v25, %s1249_s19  ;;  %v354_v52 = vpop.permute.xlu0 %353 }
 0x13c   :  { %v448_v60 = vsel %vm442_vm3, %v421_v57, inf  ;;  %v382_v61 = vsel %vm377_vm2, %v354_v52, inf }
 0x13d   :  { %v1935_v51 = vmin.f32 %v1706_v27, %v448_v60  ;;  %v1938_v50 = vmin.f32 %v1703_v30, %v382_v61 }
 0x13f   :  { %550 = vrot.lane.b32.xlu1 %v1935_v51, %s1250_s1  ;;  %v425_v63 = vpop.permute.xlu1 %424  ;;  %483 = vrot.lane.b32.xlu0 %v1938_v50, %s1249_s19  ;;  %v358_v46 = vpop.permute.xlu0 %357 }
 0x140   :  { %v450_v40 = vsel %vm442_vm3, %v425_v63, inf  ;;  %v384_v47 = vsel %vm377_vm2, %v358_v46, inf }
 0x141   :  { %v1949_v27 = vmin.f32 %v1720_v31, %v450_v40  ;;  %v1952_v30 = vmin.f32 %v1717_v18, %v384_v47 }
 0x143   :  { %554 = vrot.lane.b32.xlu1 %v1949_v27, %s1250_s1  ;;  %v429_v54 = vpop.permute.xlu1 %428  ;;  %487 = vrot.lane.b32.xlu0 %v1952_v30, %s1249_s19  ;;  %v362_v22 = vpop.permute.xlu0 %361 }
 0x144   :  { %v452_v49 = vsel %vm442_vm3, %v429_v54, inf  ;;  %v386_v26 = vsel %vm377_vm2, %v362_v22, inf }
 0x145   :  { %v1963_v31 = vmin.f32 %v1734_v56, %v452_v49  ;;  %v1966_v18 = vmin.f32 %v1731_v35, %v386_v26 }
 0x147   :  { %558 = vrot.lane.b32.xlu1 %v1963_v31, %s1250_s1  ;;  %v433_v28 = vpop.permute.xlu1 %432  ;;  %491 = vrot.lane.b32.xlu0 %v1966_v18, %s1249_s19  ;;  %v366_v55 = vpop.permute.xlu0 %365 }
 0x148   :  { %v454_v19 = vsel %vm442_vm3, %v433_v28, inf  ;;  %v388_v57 = vsel %vm377_vm2, %v366_v55, inf }
 0x149   :  { %v1977_v56 = vmin.f32 %v1748_v58, %v454_v19  ;;  %v1980_v35 = vmin.f32 %v1745_v39, %v388_v57 }
 0x14b   :  { %562 = vrot.lane.b32.xlu1 %v1977_v56, %s1250_s1  ;;  %v437_v52 = vpop.permute.xlu1 %436  ;;  %495 = vrot.lane.b32.xlu0 %v1980_v35, %s1249_s19  ;;  %v370_v60 = vpop.permute.xlu0 %369 }
 0x14c   :  { %v456_v61 = vsel %vm442_vm3, %v437_v52, inf  ;;  %v390_v63 = vsel %vm377_vm2, %v370_v60, inf }
 0x14d   :  { %v1991_v58 = vmin.f32 %v1762_v43, %v456_v61  ;;  %v1994_v39 = vmin.f32 %v1759_v23, %v390_v63 }
 0x14f   :  { %566 = vrot.lane.b32.xlu1 %v1991_v58, %s1250_s1  ;;  %v441_v46 = vpop.permute.xlu1 %440  ;;  %499 = vrot.lane.b32.xlu0 %v1994_v39, %s1249_s19  ;;  %v374_v40 = vpop.permute.xlu0 %373 }
 0x150   :  { %v458_v47 = vsel %vm442_vm3, %v441_v46, inf  ;;  %v392_v54 = vsel %vm377_vm2, %v374_v40, inf }
 0x151   :  { %v2005_v43 = vmin.f32 %v1778_v48, %v458_v47  ;;  %v2008_v23 = vmin.f32 %v1775_v62, %v392_v54 }
 0x153   :  { %570 = vrot.lane.b32.xlu1 %v2005_v43, %s1250_s1  ;;  %503 = vrot.lane.b32.xlu0 %v2008_v23, %s1249_s19  ;;  %v415_v22 = vpop.permute.xlu0 %414 }
 0x154   :  { %v445_v49 = vsel %vm442_vm3, %v415_v22, inf }
 0x155   :  { %v2017_v26 = vmin.f32 %v1785_v37, %v445_v49 }
 0x157   :  { %544 = vrot.lane.b32.xlu0 %v2017_v26, %s1250_s1  ;;  %v419_v48 = vpop.permute.xlu0 %418 }
 0x158   :  { %v447_v62 = vsel %vm442_vm3, %v419_v48, inf }
 0x159   :  { %v2024_v28 = vmin.f32 %v1795_v0, %v447_v62 }
 0x15b   :  { %548 = vrot.lane.b32.xlu0 %v2024_v28, %s1250_s1  ;;  %v423_v55 = vpop.permute.xlu0 %422 }
 0x15c   :  { %v449_v19 = vsel %vm442_vm3, %v423_v55, inf }
 0x15d   :  { %v2031_v37 = vmin.f32 %v1802_v45, %v449_v19 }
 0x15f   :  { %552 = vrot.lane.b32.xlu0 %v2031_v37, %s1250_s1  ;;  %v427_v57 = vpop.permute.xlu0 %426 }
 0x160   :  { %v451_v52 = vsel %vm442_vm3, %v427_v57, inf  ;;  %v2063_v54 = vpop.permute.xlu1 %111 }
 0x161   :  { %v2038_v0 = vmin.f32 %v1809_v42, %v451_v52  ;;  %3202 = vst [vmem:[#allocation3_spill] sm:$0xff] %v2063_v54 }
 0x163   :  { %556 = vrot.lane.b32.xlu0 %v2038_v0, %s1250_s1  ;;  %v431_v60 = vpop.permute.xlu0 %430 }
 0x164   :  { %v453_v61 = vsel %vm442_vm3, %v431_v60, inf }
 0x165   :  { %v2045_v45 = vmin.f32 %v1816_v44, %v453_v61 }
 0x167   :  { %560 = vrot.lane.b32.xlu0 %v2045_v45, %s1250_s1  ;;  %v435_v63 = vpop.permute.xlu0 %434 }
 0x168   :  { %v455_v46 = vsel %vm442_vm3, %v435_v63, inf }
 0x169   :  { %v2052_v42 = vmin.f32 %v1823_v59, %v455_v46 }
 0x16b   :  { %564 = vrot.lane.b32.xlu0 %v2052_v42, %s1250_s1  ;;  %v439_v40 = vpop.permute.xlu0 %438 }
 0x16c   :  { %v457_v47 = vsel %vm442_vm3, %v439_v40, inf }
 0x16d   :  { %v2059_v44 = vmin.f32 %v1830_v29, %v457_v47 }
 0x16f   :  { %568 = vrot.lane.b32.xlu0 %v2059_v44, %s1250_s1 }
 0x17c   :  { %v2065_v22 = vpop.permute.xlu0 %106 }
 0x17d   :  { %3203 = vst [vmem:[#allocation4_spill] sm:$0xff] %v2065_v22 }
 0x189   :  { %v478_v59 = vpop.permute.xlu1 %477  ;;  %v476_v49 = vpop.permute.xlu0 %475 }
 0x18a   :  { %v509_v48 = vsel %vm507_vm4, %v478_v59, inf  ;;  %v508_v62 = vsel %vm507_vm4, %v476_v49, inf }
 0x18b   :  { %v2073_v29 = vmin.f32 %v1843_v1, %v509_v48  ;;  %v2076_v55 = vmin.f32 %v1846_v38, %v508_v62 }
 0x18d   :  { %607 = vrot.lane.b32.xlu1 %v2073_v29, %s1251_s20  ;;  %v482_v19 = vpop.permute.xlu1 %481  ;;  %605 = vrot.lane.b32.xlu0 %v2076_v55, %s1251_s20 }
 0x18e   :  { %v511_v57 = vsel %vm507_vm4, %v482_v19, inf }
 0x18f   :  { %v2085_v52 = vmin.f32 %v1855_v33, %v511_v57 }
 0x191   :  { %611 = vrot.lane.b32.xlu1 %v2085_v52, %s1251_s20  ;;  %v486_v1 = vpop.permute.xlu1 %485 }
 0x192   :  { %v513_v38 = vsel %vm507_vm4, %v486_v1, inf }
 0x193   :  { %v2092_v60 = vmin.f32 %v1862_v53, %v513_v38 }
 0x195   :  { %615 = vrot.lane.b32.xlu1 %v2092_v60, %s1251_s20  ;;  %v490_v61 = vpop.permute.xlu1 %489 }
 0x196   :  { %v515_v63 = vsel %vm507_vm4, %v490_v61, inf }
 0x197   :  { %v2099_v33 = vmin.f32 %v1869_v32, %v515_v63 }
 0x199   :  { %619 = vrot.lane.b32.xlu1 %v2099_v33, %s1251_s20  ;;  %v494_v46 = vpop.permute.xlu1 %493 }
 0x19a   :  { %v517_v40 = vsel %vm507_vm4, %v494_v46, inf }
 0x19b   :  { %v2106_v53 = vmin.f32 %v1876_v36, %v517_v40 }
 0x19d   :  { %623 = vrot.lane.b32.xlu1 %v2106_v53, %s1251_s20  ;;  %v498_v47 = vpop.permute.xlu1 %497 }
 0x19e   :  { %v519_v59 = vsel %vm507_vm4, %v498_v47, inf }
 0x19f   :  { %v2113_v32 = vmin.f32 %v1883_v41, %v519_v59 }
 0x1a1   :  { %627 = vrot.lane.b32.xlu1 %v2113_v32, %s1251_s20  ;;  %v502_v49 = vpop.permute.xlu1 %501 }
 0x1a2   :  { %v521_v48 = vsel %vm507_vm4, %v502_v49, inf }
 0x1a3   :  { %v2120_v36 = vmin.f32 %v1890_v17, %v521_v48 }
 0x1a5   :  { %631 = vrot.lane.b32.xlu1 %v2120_v36, %s1251_s20  ;;  %v506_v62 = vpop.permute.xlu1 %505 }
 0x1a6   :  { %v523_v19 = vsel %vm507_vm4, %v506_v62, inf }
 0x1a7   :  { %v2127_v41 = vmin.f32 %v1897_v20, %v523_v19 }
 0x1a9   :  { %635 = vrot.lane.b32.xlu1 %v2127_v41, %s1251_s20  ;;  %v543_v57 = vpop.permute.xlu1 %542  ;;  %v541_v1 = vpop.permute.xlu0 %540 }
 0x1aa   :  { %v574_v17 = vsel %vm572_vm5, %v543_v57, inf  ;;  %v573_v38 = vsel %vm572_vm5, %v541_v1, inf }
 0x1ab   :  { %v2137_v61 = vmin.f32 %v1907_v21, %v574_v17  ;;  %v2140_v63 = vmin.f32 %v1910_v24, %v573_v38 }
 0x1ad   :  { %672 = vrot.lane.b32.xlu1 %v2137_v61, %s1252_s21  ;;  %v547_v20 = vpop.permute.xlu1 %546  ;;  %670 = vrot.lane.b32.xlu0 %v2140_v63, %s1252_s21  ;;  %v480_v46 = vpop.permute.xlu0 %479 }
 0x1ae   :  { %v576_v40 = vsel %vm572_vm5, %v547_v20, inf  ;;  %v510_v47 = vsel %vm507_vm4, %v480_v46, inf }
 0x1af   :  { %v2151_v21 = vmin.f32 %v1921_v34, %v576_v40  ;;  %v2154_v24 = vmin.f32 %v1924_v25, %v510_v47 }
 0x1b1   :  { %676 = vrot.lane.b32.xlu1 %v2151_v21, %s1252_s21  ;;  %v551_v59 = vpop.permute.xlu1 %550  ;;  %609 = vrot.lane.b32.xlu0 %v2154_v24, %s1251_s20  ;;  %v484_v49 = vpop.permute.xlu0 %483 }
 0x1b2   :  { %v578_v48 = vsel %vm572_vm5, %v551_v59, inf  ;;  %v512_v62 = vsel %vm507_vm4, %v484_v49, inf }
 0x1b3   :  { %v2165_v34 = vmin.f32 %v1935_v51, %v578_v48  ;;  %v2168_v25 = vmin.f32 %v1938_v50, %v512_v62 }
 0x1b5   :  { %680 = vrot.lane.b32.xlu1 %v2165_v34, %s1252_s21  ;;  %v555_v19 = vpop.permute.xlu1 %554  ;;  %613 = vrot.lane.b32.xlu0 %v2168_v25, %s1251_s20  ;;  %v488_v57 = vpop.permute.xlu0 %487 }
 0x1b6   :  { %v580_v1 = vsel %vm572_vm5, %v555_v19, inf  ;;  %v514_v17 = vsel %vm507_vm4, %v488_v57, inf }
 0x1b7   :  { %v2179_v51 = vmin.f32 %v1949_v27, %v580_v1  ;;  %v2182_v50 = vmin.f32 %v1952_v30, %v514_v17 }
 0x1b9   :  { %684 = vrot.lane.b32.xlu1 %v2179_v51, %s1252_s21  ;;  %v559_v38 = vpop.permute.xlu1 %558  ;;  %617 = vrot.lane.b32.xlu0 %v2182_v50, %s1251_s20  ;;  %v492_v20 = vpop.permute.xlu0 %491 }
 0x1ba   :  { %v582_v46 = vsel %vm572_vm5, %v559_v38, inf  ;;  %v516_v40 = vsel %vm507_vm4, %v492_v20, inf }
 0x1bb   :  { %v2193_v27 = vmin.f32 %v1963_v31, %v582_v46  ;;  %v2196_v30 = vmin.f32 %v1966_v18, %v516_v40 }
 0x1bd   :  { %688 = vrot.lane.b32.xlu1 %v2193_v27, %s1252_s21  ;;  %v563_v47 = vpop.permute.xlu1 %562  ;;  %621 = vrot.lane.b32.xlu0 %v2196_v30, %s1251_s20  ;;  %v496_v59 = vpop.permute.xlu0 %495 }
 0x1be   :  { %v584_v49 = vsel %vm572_vm5, %v563_v47, inf  ;;  %v518_v48 = vsel %vm507_vm4, %v496_v59, inf }
 0x1bf   :  { %v2207_v31 = vmin.f32 %v1977_v56, %v584_v49  ;;  %v2210_v18 = vmin.f32 %v1980_v35, %v518_v48 }
 0x1c1   :  { %692 = vrot.lane.b32.xlu1 %v2207_v31, %s1252_s21  ;;  %v567_v62 = vpop.permute.xlu1 %566  ;;  %625 = vrot.lane.b32.xlu0 %v2210_v18, %s1251_s20  ;;  %v500_v19 = vpop.permute.xlu0 %499 }
 0x1c2   :  { %v586_v57 = vsel %vm572_vm5, %v567_v62, inf  ;;  %v520_v1 = vsel %vm507_vm4, %v500_v19, inf }
 0x1c3   :  { %v2221_v56 = vmin.f32 %v1991_v58, %v586_v57  ;;  %v2224_v35 = vmin.f32 %v1994_v39, %v520_v1 }
 0x1c5   :  { %696 = vrot.lane.b32.xlu1 %v2221_v56, %s1252_s21  ;;  %v571_v17 = vpop.permute.xlu1 %570  ;;  %629 = vrot.lane.b32.xlu0 %v2224_v35, %s1251_s20  ;;  %v504_v38 = vpop.permute.xlu0 %503 }
 0x1c6   :  { %v588_v20 = vsel %vm572_vm5, %v571_v17, inf  ;;  %v522_v46 = vsel %vm507_vm4, %v504_v38, inf }
 0x1c7   :  { %v2235_v58 = vmin.f32 %v2005_v43, %v588_v20  ;;  %v2238_v39 = vmin.f32 %v2008_v23, %v522_v46 }
 0x1c9   :  { %700 = vrot.lane.b32.xlu1 %v2235_v58, %s1252_s21  ;;  %633 = vrot.lane.b32.xlu0 %v2238_v39, %s1251_s20  ;;  %v545_v40 = vpop.permute.xlu0 %544 }
 0x1ca   :  { %v575_v47 = vsel %vm572_vm5, %v545_v40, inf }
 0x1cb   :  { %v2247_v59 = vmin.f32 %v2017_v26, %v575_v47 }
 0x1cd   :  { %674 = vrot.lane.b32.xlu0 %v2247_v59, %s1252_s21  ;;  %v549_v43 = vpop.permute.xlu0 %548 }
 0x1ce   :  { %v577_v23 = vsel %vm572_vm5, %v549_v43, inf }
 0x1cf   :  { %v2254_v49 = vmin.f32 %v2024_v28, %v577_v23 }
 0x1d1   :  { %678 = vrot.lane.b32.xlu0 %v2254_v49, %s1252_s21  ;;  %v553_v48 = vpop.permute.xlu0 %552 }
 0x1d2   :  { %v579_v62 = vsel %vm572_vm5, %v553_v48, inf }
 0x1d3   :  { %v2261_v26 = vmin.f32 %v2031_v37, %v579_v62 }
 0x1d5   :  { %682 = vrot.lane.b32.xlu0 %v2261_v26, %s1252_s21  ;;  %v557_v19 = vpop.permute.xlu0 %556 }
 0x1d6   :  { %v581_v57 = vsel %vm572_vm5, %v557_v19, inf }
 0x1d7   :  { %v2268_v28 = vmin.f32 %v2038_v0, %v581_v57 }
 0x1d9   :  { %686 = vrot.lane.b32.xlu0 %v2268_v28, %s1252_s21  ;;  %v561_v1 = vpop.permute.xlu0 %560 }
 0x1da   :  { %v583_v17 = vsel %vm572_vm5, %v561_v1, inf }
 0x1db   :  { %v2275_v37 = vmin.f32 %v2045_v45, %v583_v17 }
 0x1dd   :  { %690 = vrot.lane.b32.xlu0 %v2275_v37, %s1252_s21  ;;  %v565_v38 = vpop.permute.xlu0 %564 }
 0x1de   :  { %v585_v20 = vsel %vm572_vm5, %v565_v38, inf }
 0x1df   :  { %v2282_v0 = vmin.f32 %v2052_v42, %v585_v20 }
 0x1e1   :  { %694 = vrot.lane.b32.xlu0 %v2282_v0, %s1252_s21  ;;  %v569_v46 = vpop.permute.xlu0 %568 }
 0x1e2   :  { %v587_v40 = vsel %vm572_vm5, %v569_v46, inf }
 0x1e3   :  { %v2289_v45 = vmin.f32 %v2059_v44, %v587_v40 }
 0x1e5   :  { %698 = vrot.lane.b32.xlu0 %v2289_v45, %s1252_s21 }
 0x1ff   :  { %v608_v47 = vpop.permute.xlu1 %607  ;;  %v606_v43 = vpop.permute.xlu0 %605 }
 0x200   :  { %v639_v42 = vsel %vm637_vm6, %v608_v47, inf  ;;  %v638_v23 = vsel %vm637_vm6, %v606_v43, inf }
 0x201   :  { %v2299_v48 = vmin.f32 %v2073_v29, %v639_v42  ;;  %v2302_v62 = vmin.f32 %v2076_v55, %v638_v23 }
 0x203   :  { %737 = vrot.lane.b32.xlu1 %v2299_v48, %s1253_s22  ;;  %v612_v44 = vpop.permute.xlu1 %611  ;;  %735 = vrot.lane.b32.xlu0 %v2302_v62, %s1253_s22 }
 0x204   :  { %v641_v19 = vsel %vm637_vm6, %v612_v44, inf }
 0x205   :  { %v2311_v57 = vmin.f32 %v2085_v52, %v641_v19 }
 0x207   :  { %741 = vrot.lane.b32.xlu1 %v2311_v57, %s1253_s22  ;;  %v616_v29 = vpop.permute.xlu1 %615 }
 0x208   :  { %v643_v55 = vsel %vm637_vm6, %v616_v29, inf }
 0x209   :  { %v2318_v1 = vmin.f32 %v2092_v60, %v643_v55 }
 0x20b   :  { %745 = vrot.lane.b32.xlu1 %v2318_v1, %s1253_s22  ;;  %v620_v17 = vpop.permute.xlu1 %619 }
 0x20c   :  { %v645_v38 = vsel %vm637_vm6, %v620_v17, inf }
 0x20d   :  { %v2325_v52 = vmin.f32 %v2099_v33, %v645_v38 }
 0x20f   :  { %749 = vrot.lane.b32.xlu1 %v2325_v52, %s1253_s22  ;;  %v624_v20 = vpop.permute.xlu1 %623 }
 0x210   :  { %v647_v46 = vsel %vm637_vm6, %v624_v20, inf }
 0x211   :  { %v2332_v60 = vmin.f32 %v2106_v53, %v647_v46 }
 0x213   :  { %753 = vrot.lane.b32.xlu1 %v2332_v60, %s1253_s22  ;;  %v628_v40 = vpop.permute.xlu1 %627 }
 0x214   :  { %v649_v47 = vsel %vm637_vm6, %v628_v40, inf }
 0x215   :  { %v2339_v33 = vmin.f32 %v2113_v32, %v649_v47 }
 0x217   :  { %757 = vrot.lane.b32.xlu1 %v2339_v33, %s1253_s22  ;;  %v632_v43 = vpop.permute.xlu1 %631 }
 0x218   :  { %v651_v42 = vsel %vm637_vm6, %v632_v43, inf }
 0x219   :  { %v2346_v53 = vmin.f32 %v2120_v36, %v651_v42 }
 0x21b   :  { %761 = vrot.lane.b32.xlu1 %v2346_v53, %s1253_s22  ;;  %v636_v23 = vpop.permute.xlu1 %635 }
 0x21c   :  { %v653_v44 = vsel %vm637_vm6, %v636_v23, inf }
 0x21d   :  { %v2353_v32 = vmin.f32 %v2127_v41, %v653_v44 }
 0x21f   :  { %765 = vrot.lane.b32.xlu1 %v2353_v32, %s1253_s22  ;;  %v673_v19 = vpop.permute.xlu1 %672  ;;  %v671_v29 = vpop.permute.xlu0 %670 }
 0x220   :  { %v704_v36 = vsel %vm702_vm7, %v673_v19, inf  ;;  %v703_v55 = vsel %vm702_vm7, %v671_v29, inf }
 0x221   :  { %v2363_v17 = vmin.f32 %v2137_v61, %v704_v36  ;;  %v2366_v38 = vmin.f32 %v2140_v63, %v703_v55 }
 0x223   :  { %802 = vrot.lane.b32.xlu1 %v2363_v17, %s1254_s23  ;;  %v677_v41 = vpop.permute.xlu1 %676  ;;  %800 = vrot.lane.b32.xlu0 %v2366_v38, %s1254_s23  ;;  %v610_v20 = vpop.permute.xlu0 %609 }
 0x224   :  { %v706_v46 = vsel %vm702_vm7, %v677_v41, inf  ;;  %v640_v40 = vsel %vm637_vm6, %v610_v20, inf }
 0x225   :  { %v2377_v61 = vmin.f32 %v2151_v21, %v706_v46  ;;  %v2380_v63 = vmin.f32 %v2154_v24, %v640_v40 }
 0x227   :  { %806 = vrot.lane.b32.xlu1 %v2377_v61, %s1254_s23  ;;  %v681_v47 = vpop.permute.xlu1 %680  ;;  %739 = vrot.lane.b32.xlu0 %v2380_v63, %s1253_s22  ;;  %v614_v43 = vpop.permute.xlu0 %613 }
 0x228   :  { %v708_v42 = vsel %vm702_vm7, %v681_v47, inf  ;;  %v642_v23 = vsel %vm637_vm6, %v614_v43, inf }
 0x229   :  { %v2391_v21 = vmin.f32 %v2165_v34, %v708_v42  ;;  %v2394_v24 = vmin.f32 %v2168_v25, %v642_v23 }
 0x22b   :  { %810 = vrot.lane.b32.xlu1 %v2391_v21, %s1254_s23  ;;  %v685_v44 = vpop.permute.xlu1 %684  ;;  %743 = vrot.lane.b32.xlu0 %v2394_v24, %s1253_s22  ;;  %v618_v19 = vpop.permute.xlu0 %617 }
 0x22c   :  { %v710_v29 = vsel %vm702_vm7, %v685_v44, inf  ;;  %v644_v36 = vsel %vm637_vm6, %v618_v19, inf }
 0x22d   :  { %v2405_v34 = vmin.f32 %v2179_v51, %v710_v29  ;;  %v2408_v25 = vmin.f32 %v2182_v50, %v644_v36 }
 0x22f   :  { %814 = vrot.lane.b32.xlu1 %v2405_v34, %s1254_s23  ;;  %v689_v55 = vpop.permute.xlu1 %688  ;;  %747 = vrot.lane.b32.xlu0 %v2408_v25, %s1253_s22  ;;  %v622_v41 = vpop.permute.xlu0 %621 }
 0x230   :  { %v712_v20 = vsel %vm702_vm7, %v689_v55, inf  ;;  %v646_v46 = vsel %vm637_vm6, %v622_v41, inf }
 0x231   :  { %v2419_v51 = vmin.f32 %v2193_v27, %v712_v20  ;;  %v2422_v50 = vmin.f32 %v2196_v30, %v646_v46 }
 0x233   :  { %818 = vrot.lane.b32.xlu1 %v2419_v51, %s1254_s23  ;;  %v693_v40 = vpop.permute.xlu1 %692  ;;  %751 = vrot.lane.b32.xlu0 %v2422_v50, %s1253_s22  ;;  %v626_v47 = vpop.permute.xlu0 %625 }
 0x234   :  { %v714_v43 = vsel %vm702_vm7, %v693_v40, inf  ;;  %v648_v42 = vsel %vm637_vm6, %v626_v47, inf }
 0x235   :  { %v2433_v27 = vmin.f32 %v2207_v31, %v714_v43  ;;  %v2436_v30 = vmin.f32 %v2210_v18, %v648_v42 }
 0x237   :  { %822 = vrot.lane.b32.xlu1 %v2433_v27, %s1254_s23  ;;  %v697_v23 = vpop.permute.xlu1 %696  ;;  %755 = vrot.lane.b32.xlu0 %v2436_v30, %s1253_s22  ;;  %v630_v44 = vpop.permute.xlu0 %629 }
 0x238   :  { %v716_v19 = vsel %vm702_vm7, %v697_v23, inf  ;;  %v650_v29 = vsel %vm637_vm6, %v630_v44, inf }
 0x239   :  { %v2447_v31 = vmin.f32 %v2221_v56, %v716_v19  ;;  %v2450_v18 = vmin.f32 %v2224_v35, %v650_v29 }
 0x23b   :  { %826 = vrot.lane.b32.xlu1 %v2447_v31, %s1254_s23  ;;  %v701_v36 = vpop.permute.xlu1 %700  ;;  %759 = vrot.lane.b32.xlu0 %v2450_v18, %s1253_s22  ;;  %v634_v55 = vpop.permute.xlu0 %633 }
 0x23c   :  { %v718_v41 = vsel %vm702_vm7, %v701_v36, inf  ;;  %v652_v20 = vsel %vm637_vm6, %v634_v55, inf }
 0x23d   :  { %v2461_v56 = vmin.f32 %v2235_v58, %v718_v41  ;;  %v2464_v35 = vmin.f32 %v2238_v39, %v652_v20 }
 0x23f   :  { %830 = vrot.lane.b32.xlu1 %v2461_v56, %s1254_s23  ;;  %763 = vrot.lane.b32.xlu0 %v2464_v35, %s1253_s22  ;;  %v675_v46 = vpop.permute.xlu0 %674 }
 0x240   :  { %v705_v40 = vsel %vm702_vm7, %v675_v46, inf }
 0x241   :  { %v2473_v47 = vmin.f32 %v2247_v59, %v705_v40 }
 0x243   :  { %804 = vrot.lane.b32.xlu0 %v2473_v47, %s1254_s23  ;;  %v679_v58 = vpop.permute.xlu0 %678 }
 0x244   :  { %v707_v39 = vsel %vm702_vm7, %v679_v58, inf }
 0x245   :  { %v2480_v43 = vmin.f32 %v2254_v49, %v707_v39 }
 0x247   :  { %808 = vrot.lane.b32.xlu0 %v2480_v43, %s1254_s23  ;;  %v683_v42 = vpop.permute.xlu0 %682 }
 0x248   :  { %v709_v23 = vsel %vm702_vm7, %v683_v42, inf }
 0x249   :  { %v2487_v59 = vmin.f32 %v2261_v26, %v709_v23 }
 0x24b   :  { %812 = vrot.lane.b32.xlu0 %v2487_v59, %s1254_s23  ;;  %v687_v44 = vpop.permute.xlu0 %686 }
 0x24c   :  { %v711_v19 = vsel %vm702_vm7, %v687_v44, inf }
 0x24d   :  { %v2494_v49 = vmin.f32 %v2268_v28, %v711_v19 }
 0x24f   :  { %816 = vrot.lane.b32.xlu0 %v2494_v49, %s1254_s23  ;;  %v691_v29 = vpop.permute.xlu0 %690 }
 0x250   :  { %v713_v36 = vsel %vm702_vm7, %v691_v29, inf }
 0x251   :  { %v2501_v26 = vmin.f32 %v2275_v37, %v713_v36 }
 0x253   :  { %820 = vrot.lane.b32.xlu0 %v2501_v26, %s1254_s23  ;;  %v695_v55 = vpop.permute.xlu0 %694 }
 0x254   :  { %v715_v41 = vsel %vm702_vm7, %v695_v55, inf }
 0x255   :  { %v2508_v28 = vmin.f32 %v2282_v0, %v715_v41 }
 0x257   :  { %824 = vrot.lane.b32.xlu0 %v2508_v28, %s1254_s23  ;;  %v699_v20 = vpop.permute.xlu0 %698 }
 0x258   :  { %v717_v46 = vsel %vm702_vm7, %v699_v20, inf }
 0x259   :  { %v2515_v37 = vmin.f32 %v2289_v45, %v717_v46 }
 0x25b   :  { %828 = vrot.lane.b32.xlu0 %v2515_v37, %s1254_s23 }
 0x275   :  { %v738_v40 = vpop.permute.xlu1 %737  ;;  %v736_v58 = vpop.permute.xlu0 %735 }
 0x276   :  { %v769_v0 = vsel %vm767_vm8, %v738_v40, inf  ;;  %v768_v39 = vsel %vm767_vm8, %v736_v58, inf }
 0x277   :  { %v2525_v42 = vmin.f32 %v2299_v48, %v769_v0  ;;  %v2528_v23 = vmin.f32 %v2302_v62, %v768_v39 }
 0x279   :  { %867 = vrot.lane.b32.xlu1 %v2525_v42, %s1255_s24  ;;  %v742_v45 = vpop.permute.xlu1 %741  ;;  %865 = vrot.lane.b32.xlu0 %v2528_v23, %s1255_s24 }
 0x27a   :  { %v771_v44 = vsel %vm767_vm8, %v742_v45, inf }
 0x27b   :  { %v2537_v19 = vmin.f32 %v2311_v57, %v771_v44 }
 0x27d   :  { %871 = vrot.lane.b32.xlu1 %v2537_v19, %s1255_s24  ;;  %v746_v48 = vpop.permute.xlu1 %745 }
 0x27e   :  { %v773_v62 = vsel %vm767_vm8, %v746_v48, inf }
 0x27f   :  { %v2544_v29 = vmin.f32 %v2318_v1, %v773_v62 }
 0x281   :  { %875 = vrot.lane.b32.xlu1 %v2544_v29, %s1255_s24  ;;  %v750_v36 = vpop.permute.xlu1 %749 }
 0x282   :  { %v775_v55 = vsel %vm767_vm8, %v750_v36, inf }
 0x283   :  { %v2551_v57 = vmin.f32 %v2325_v52, %v775_v55 }
 0x285   :  { %879 = vrot.lane.b32.xlu1 %v2551_v57, %s1255_s24  ;;  %v754_v41 = vpop.permute.xlu1 %753 }
 0x286   :  { %v777_v20 = vsel %vm767_vm8, %v754_v41, inf }
 0x287   :  { %v2558_v1 = vmin.f32 %v2332_v60, %v777_v20 }
 0x289   :  { %883 = vrot.lane.b32.xlu1 %v2558_v1, %s1255_s24  ;;  %v758_v46 = vpop.permute.xlu1 %757 }
 0x28a   :  { %v779_v40 = vsel %vm767_vm8, %v758_v46, inf }
 0x28b   :  { %v2565_v52 = vmin.f32 %v2339_v33, %v779_v40 }
 0x28d   :  { %887 = vrot.lane.b32.xlu1 %v2565_v52, %s1255_s24  ;;  %v762_v58 = vpop.permute.xlu1 %761 }
 0x28e   :  { %v781_v0 = vsel %vm767_vm8, %v762_v58, inf }
 0x28f   :  { %v2572_v60 = vmin.f32 %v2346_v53, %v781_v0 }
 0x291   :  { %891 = vrot.lane.b32.xlu1 %v2572_v60, %s1255_s24  ;;  %v766_v39 = vpop.permute.xlu1 %765 }
 0x292   :  { %v783_v45 = vsel %vm767_vm8, %v766_v39, inf }
 0x293   :  { %v2579_v33 = vmin.f32 %v2353_v32, %v783_v45 }
 0x295   :  { %895 = vrot.lane.b32.xlu1 %v2579_v33, %s1255_s24  ;;  %v803_v44 = vpop.permute.xlu1 %802  ;;  %v801_v48 = vpop.permute.xlu0 %800 }
 0x296   :  { %v834_v53 = vsel %vm832_vm9, %v803_v44, inf  ;;  %v833_v62 = vsel %vm832_vm9, %v801_v48, inf }
 0x297   :  { %v2589_v36 = vmin.f32 %v2363_v17, %v834_v53  ;;  %v2592_v55 = vmin.f32 %v2366_v38, %v833_v62 }
 0x299   :  { %932 = vrot.lane.b32.xlu1 %v2589_v36, %s1256_s25  ;;  %v807_v32 = vpop.permute.xlu1 %806  ;;  %930 = vrot.lane.b32.xlu0 %v2592_v55, %s1256_s25  ;;  %v740_v41 = vpop.permute.xlu0 %739 }
 0x29a   :  { %v836_v20 = vsel %vm832_vm9, %v807_v32, inf  ;;  %v770_v46 = vsel %vm767_vm8, %v740_v41, inf }
 0x29b   :  { %v2603_v17 = vmin.f32 %v2377_v61, %v836_v20  ;;  %v2606_v38 = vmin.f32 %v2380_v63, %v770_v46 }
 0x29d   :  { %936 = vrot.lane.b32.xlu1 %v2603_v17, %s1256_s25  ;;  %v811_v40 = vpop.permute.xlu1 %810  ;;  %869 = vrot.lane.b32.xlu0 %v2606_v38, %s1255_s24  ;;  %v744_v58 = vpop.permute.xlu0 %743 }
 0x29e   :  { %v838_v0 = vsel %vm832_vm9, %v811_v40, inf  ;;  %v772_v39 = vsel %vm767_vm8, %v744_v58, inf }
 0x29f   :  { %v2617_v61 = vmin.f32 %v2391_v21, %v838_v0  ;;  %v2620_v63 = vmin.f32 %v2394_v24, %v772_v39 }
 0x2a1   :  { %940 = vrot.lane.b32.xlu1 %v2617_v61, %s1256_s25  ;;  %v815_v45 = vpop.permute.xlu1 %814  ;;  %873 = vrot.lane.b32.xlu0 %v2620_v63, %s1255_s24  ;;  %v748_v44 = vpop.permute.xlu0 %747 }
 0x2a2   :  { %v840_v48 = vsel %vm832_vm9, %v815_v45, inf  ;;  %v774_v53 = vsel %vm767_vm8, %v748_v44, inf }
 0x2a3   :  { %v2631_v21 = vmin.f32 %v2405_v34, %v840_v48  ;;  %v2634_v24 = vmin.f32 %v2408_v25, %v774_v53 }
 0x2a5   :  { %944 = vrot.lane.b32.xlu1 %v2631_v21, %s1256_s25  ;;  %v819_v62 = vpop.permute.xlu1 %818  ;;  %877 = vrot.lane.b32.xlu0 %v2634_v24, %s1255_s24  ;;  %v752_v32 = vpop.permute.xlu0 %751 }
 0x2a6   :  { %v842_v41 = vsel %vm832_vm9, %v819_v62, inf  ;;  %v776_v20 = vsel %vm767_vm8, %v752_v32, inf }
 0x2a7   :  { %v2645_v34 = vmin.f32 %v2419_v51, %v842_v41  ;;  %v2648_v25 = vmin.f32 %v2422_v50, %v776_v20 }
 0x2a9   :  { %948 = vrot.lane.b32.xlu1 %v2645_v34, %s1256_s25  ;;  %v823_v46 = vpop.permute.xlu1 %822  ;;  %881 = vrot.lane.b32.xlu0 %v2648_v25, %s1255_s24  ;;  %v756_v40 = vpop.permute.xlu0 %755 }
 0x2aa   :  { %v844_v58 = vsel %vm832_vm9, %v823_v46, inf  ;;  %v778_v0 = vsel %vm767_vm8, %v756_v40, inf }
 0x2ab   :  { %v2659_v51 = vmin.f32 %v2433_v27, %v844_v58  ;;  %v2662_v50 = vmin.f32 %v2436_v30, %v778_v0 }
 0x2ad   :  { %952 = vrot.lane.b32.xlu1 %v2659_v51, %s1256_s25  ;;  %v827_v39 = vpop.permute.xlu1 %826  ;;  %885 = vrot.lane.b32.xlu0 %v2662_v50, %s1255_s24  ;;  %v760_v45 = vpop.permute.xlu0 %759 }
 0x2ae   :  { %v846_v44 = vsel %vm832_vm9, %v827_v39, inf  ;;  %v780_v48 = vsel %vm767_vm8, %v760_v45, inf }
 0x2af   :  { %v2673_v27 = vmin.f32 %v2447_v31, %v846_v44  ;;  %v2676_v30 = vmin.f32 %v2450_v18, %v780_v48 }
 0x2b1   :  { %956 = vrot.lane.b32.xlu1 %v2673_v27, %s1256_s25  ;;  %v831_v53 = vpop.permute.xlu1 %830  ;;  %889 = vrot.lane.b32.xlu0 %v2676_v30, %s1255_s24  ;;  %v764_v62 = vpop.permute.xlu0 %763 }
 0x2b2   :  { %v848_v32 = vsel %vm832_vm9, %v831_v53, inf  ;;  %v782_v41 = vsel %vm767_vm8, %v764_v62, inf }
 0x2b3   :  { %v2687_v31 = vmin.f32 %v2461_v56, %v848_v32  ;;  %v2690_v18 = vmin.f32 %v2464_v35, %v782_v41 }
 0x2b5   :  { %960 = vrot.lane.b32.xlu1 %v2687_v31, %s1256_s25  ;;  %893 = vrot.lane.b32.xlu0 %v2690_v18, %s1255_s24  ;;  %v805_v20 = vpop.permute.xlu0 %804 }
 0x2b6   :  { %v835_v46 = vsel %vm832_vm9, %v805_v20, inf }
 0x2b7   :  { %v2699_v40 = vmin.f32 %v2473_v47, %v835_v46 }
 0x2b9   :  { %934 = vrot.lane.b32.xlu0 %v2699_v40, %s1256_s25  ;;  %v809_v56 = vpop.permute.xlu0 %808 }
 0x2ba   :  { %v837_v35 = vsel %vm832_vm9, %v809_v56, inf }
 0x2bb   :  { %v2706_v58 = vmin.f32 %v2480_v43, %v837_v35 }
 0x2bd   :  { %938 = vrot.lane.b32.xlu0 %v2706_v58, %s1256_s25  ;;  %v813_v0 = vpop.permute.xlu0 %812 }
 0x2be   :  { %v839_v39 = vsel %vm832_vm9, %v813_v0, inf }
 0x2bf   :  { %v2713_v47 = vmin.f32 %v2487_v59, %v839_v39 }
 0x2c1   :  { %942 = vrot.lane.b32.xlu0 %v2713_v47, %s1256_s25  ;;  %v817_v45 = vpop.permute.xlu0 %816 }
 0x2c2   :  { %v841_v44 = vsel %vm832_vm9, %v817_v45, inf }
 0x2c3   :  { %v2720_v43 = vmin.f32 %v2494_v49, %v841_v44 }
 0x2c5   :  { %946 = vrot.lane.b32.xlu0 %v2720_v43, %s1256_s25  ;;  %v821_v48 = vpop.permute.xlu0 %820 }
 0x2c6   :  { %v843_v53 = vsel %vm832_vm9, %v821_v48, inf }
 0x2c7   :  { %v2727_v59 = vmin.f32 %v2501_v26, %v843_v53 }
 0x2c9   :  { %950 = vrot.lane.b32.xlu0 %v2727_v59, %s1256_s25  ;;  %v825_v62 = vpop.permute.xlu0 %824 }
 0x2ca   :  { %v845_v32 = vsel %vm832_vm9, %v825_v62, inf }
 0x2cb   :  { %v2734_v49 = vmin.f32 %v2508_v28, %v845_v32 }
 0x2cd   :  { %954 = vrot.lane.b32.xlu0 %v2734_v49, %s1256_s25  ;;  %v829_v41 = vpop.permute.xlu0 %828 }
 0x2ce   :  { %v847_v20 = vsel %vm832_vm9, %v829_v41, inf }
 0x2cf   :  { %v2741_v26 = vmin.f32 %v2515_v37, %v847_v20 }
 0x2d1   :  { %958 = vrot.lane.b32.xlu0 %v2741_v26, %s1256_s25 }
 0x2eb   :  { %v868_v46 = vpop.permute.xlu1 %867  ;;  %v866_v56 = vpop.permute.xlu0 %865 }
 0x2ec   :  { %v899_v28 = vsel %vm897_vm10, %v868_v46, inf  ;;  %v898_v35 = vsel %vm897_vm10, %v866_v56, inf }
 0x2ed   :  { %v2751_v0 = vmin.f32 %v2525_v42, %v899_v28  ;;  %v2754_v39 = vmin.f32 %v2528_v23, %v898_v35 }
 0x2ef   :  { %997 = vrot.lane.b32.xlu1 %v2751_v0, %s1257_s26  ;;  %v872_v37 = vpop.permute.xlu1 %871  ;;  %995 = vrot.lane.b32.xlu0 %v2754_v39, %s1257_s26 }
 0x2f0   :  { %v901_v45 = vsel %vm897_vm10, %v872_v37, inf }
 0x2f1   :  { %v2763_v44 = vmin.f32 %v2537_v19, %v901_v45 }
 0x2f3   :  { %1001 = vrot.lane.b32.xlu1 %v2763_v44, %s1257_s26  ;;  %v876_v42 = vpop.permute.xlu1 %875 }
 0x2f4   :  { %v903_v23 = vsel %vm897_vm10, %v876_v42, inf }
 0x2f5   :  { %v2770_v48 = vmin.f32 %v2544_v29, %v903_v23 }
 0x2f7   :  { %1005 = vrot.lane.b32.xlu1 %v2770_v48, %s1257_s26  ;;  %v880_v53 = vpop.permute.xlu1 %879 }
 0x2f8   :  { %v905_v62 = vsel %vm897_vm10, %v880_v53, inf }
 0x2f9   :  { %v2777_v19 = vmin.f32 %v2551_v57, %v905_v62 }
 0x2fb   :  { %1009 = vrot.lane.b32.xlu1 %v2777_v19, %s1257_s26  ;;  %v884_v32 = vpop.permute.xlu1 %883 }
 0x2fc   :  { %v907_v41 = vsel %vm897_vm10, %v884_v32, inf }
 0x2fd   :  { %v2784_v29 = vmin.f32 %v2558_v1, %v907_v41 }
 0x2ff   :  { %1013 = vrot.lane.b32.xlu1 %v2784_v29, %s1257_s26  ;;  %v888_v20 = vpop.permute.xlu1 %887 }
 0x300   :  { %v909_v46 = vsel %vm897_vm10, %v888_v20, inf }
 0x301   :  { %v2791_v57 = vmin.f32 %v2565_v52, %v909_v46 }
 0x303   :  { %1017 = vrot.lane.b32.xlu1 %v2791_v57, %s1257_s26  ;;  %v892_v56 = vpop.permute.xlu1 %891 }
 0x304   :  { %v911_v28 = vsel %vm897_vm10, %v892_v56, inf }
 0x305   :  { %v2798_v1 = vmin.f32 %v2572_v60, %v911_v28 }
 0x307   :  { %1021 = vrot.lane.b32.xlu1 %v2798_v1, %s1257_s26  ;;  %v896_v35 = vpop.permute.xlu1 %895 }
 0x308   :  { %v913_v37 = vsel %vm897_vm10, %v896_v35, inf }
 0x309   :  { %v2805_v52 = vmin.f32 %v2579_v33, %v913_v37 }
 0x30b   :  { %3204 = vst [vmem:[#allocation5_spill] sm:$0xff] %v2805_v52  ;;  %1025 = vrot.lane.b32.xlu1 %v2805_v52, %s1257_s26  ;;  %v933_v45 = vpop.permute.xlu1 %932  ;;  %v931_v42 = vpop.permute.xlu0 %930 }
 0x30c   :  { %v964_v60 = vsel %vm962_vm11, %v933_v45, inf  ;;  %v963_v23 = vsel %vm962_vm11, %v931_v42, inf }
 0x30d   :  { %v2815_v53 = vmin.f32 %v2589_v36, %v964_v60  ;;  %v2818_v62 = vmin.f32 %v2592_v55, %v963_v23 }
 0x30f   :  { %1062 = vrot.lane.b32.xlu1 %v2815_v53, %s1257_s26  ;;  %v937_v33 = vpop.permute.xlu1 %936  ;;  %1060 = vrot.lane.b32.xlu0 %v2818_v62, %s1257_s26  ;;  %v870_v32 = vpop.permute.xlu0 %869 }
 0x310   :  { %v966_v41 = vsel %vm962_vm11, %v937_v33, inf  ;;  %v900_v20 = vsel %vm897_vm10, %v870_v32, inf }
 0x311   :  { %v2829_v36 = vmin.f32 %v2603_v17, %v966_v41  ;;  %v2832_v55 = vmin.f32 %v2606_v38, %v900_v20 }
 0x313   :  { %1066 = vrot.lane.b32.xlu1 %v2829_v36, %s1257_s26  ;;  %v941_v46 = vpop.permute.xlu1 %940  ;;  %999 = vrot.lane.b32.xlu0 %v2832_v55, %s1257_s26  ;;  %v874_v56 = vpop.permute.xlu0 %873 }
 0x314   :  { %v968_v28 = vsel %vm962_vm11, %v941_v46, inf  ;;  %v902_v35 = vsel %vm897_vm10, %v874_v56, inf }
 0x315   :  { %v2843_v17 = vmin.f32 %v2617_v61, %v968_v28  ;;  %v2846_v38 = vmin.f32 %v2620_v63, %v902_v35 }
 0x317   :  { %1070 = vrot.lane.b32.xlu1 %v2843_v17, %s1257_s26  ;;  %v945_v37 = vpop.permute.xlu1 %944  ;;  %1003 = vrot.lane.b32.xlu0 %v2846_v38, %s1257_s26  ;;  %v878_v45 = vpop.permute.xlu0 %877 }
 0x318   :  { %v970_v42 = vsel %vm962_vm11, %v945_v37, inf  ;;  %v904_v60 = vsel %vm897_vm10, %v878_v45, inf }
 0x319   :  { %v2857_v61 = vmin.f32 %v2631_v21, %v970_v42  ;;  %v2860_v63 = vmin.f32 %v2634_v24, %v904_v60 }
 0x31b   :  { %1074 = vrot.lane.b32.xlu1 %v2857_v61, %s1257_s26  ;;  %v949_v23 = vpop.permute.xlu1 %948  ;;  %1007 = vrot.lane.b32.xlu0 %v2860_v63, %s1257_s26  ;;  %v882_v33 = vpop.permute.xlu0 %881 }
 0x31c   :  { %v972_v32 = vsel %vm962_vm11, %v949_v23, inf  ;;  %v906_v41 = vsel %vm897_vm10, %v882_v33, inf }
 0x31d   :  { %v2871_v21 = vmin.f32 %v2645_v34, %v972_v32  ;;  %v2874_v24 = vmin.f32 %v2648_v25, %v906_v41 }
 0x31f   :  { %1078 = vrot.lane.b32.xlu1 %v2871_v21, %s1257_s26  ;;  %v953_v20 = vpop.permute.xlu1 %952  ;;  %1011 = vrot.lane.b32.xlu0 %v2874_v24, %s1257_s26  ;;  %v886_v46 = vpop.permute.xlu0 %885 }
 0x320   :  { %v974_v56 = vsel %vm962_vm11, %v953_v20, inf  ;;  %v908_v28 = vsel %vm897_vm10, %v886_v46, inf }
 0x321   :  { %v2885_v34 = vmin.f32 %v2659_v51, %v974_v56  ;;  %v2888_v25 = vmin.f32 %v2662_v50, %v908_v28 }
 0x323   :  { %1082 = vrot.lane.b32.xlu1 %v2885_v34, %s1257_s26  ;;  %v957_v35 = vpop.permute.xlu1 %956  ;;  %1015 = vrot.lane.b32.xlu0 %v2888_v25, %s1257_s26  ;;  %v890_v37 = vpop.permute.xlu0 %889 }
 0x324   :  { %v976_v45 = vsel %vm962_vm11, %v957_v35, inf  ;;  %v910_v42 = vsel %vm897_vm10, %v890_v37, inf }
 0x325   :  { %v2899_v51 = vmin.f32 %v2673_v27, %v976_v45  ;;  %v2902_v50 = vmin.f32 %v2676_v30, %v910_v42 }
 0x327   :  { %1086 = vrot.lane.b32.xlu1 %v2899_v51, %s1257_s26  ;;  %v961_v60 = vpop.permute.xlu1 %960  ;;  %1019 = vrot.lane.b32.xlu0 %v2902_v50, %s1257_s26  ;;  %v894_v23 = vpop.permute.xlu0 %893 }
 0x328   :  { %v978_v33 = vsel %vm962_vm11, %v961_v60, inf  ;;  %v912_v32 = vsel %vm897_vm10, %v894_v23, inf }
 0x329   :  { %v2913_v27 = vmin.f32 %v2687_v31, %v978_v33  ;;  %v2916_v30 = vmin.f32 %v2690_v18, %v912_v32 }
 0x32b   :  { %3205 = vst [vmem:[#allocation6_spill] sm:$0xff] %v2913_v27  ;;  %3206 = vst [vmem:[#allocation7_spill] sm:$0xff] %v2916_v30  ;;  %1090 = vrot.lane.b32.xlu1 %v2913_v27, %s1257_s26  ;;  %1023 = vrot.lane.b32.xlu0 %v2916_v30, %s1257_s26  ;;  %v935_v41 = vpop.permute.xlu0 %934 }
 0x32c   :  { %v965_v20 = vsel %vm962_vm11, %v935_v41, inf }
 0x32d   :  { %v2925_v46 = vmin.f32 %v2699_v40, %v965_v20 }
 0x32f   :  { %1064 = vrot.lane.b32.xlu0 %v2925_v46, %s1257_s26  ;;  %v939_v31 = vpop.permute.xlu0 %938 }
 0x330   :  { %v967_v18 = vsel %vm962_vm11, %v939_v31, inf }
 0x331   :  { %v2932_v56 = vmin.f32 %v2706_v58, %v967_v18 }
 0x333   :  { %1068 = vrot.lane.b32.xlu0 %v2932_v56, %s1257_s26  ;;  %v943_v28 = vpop.permute.xlu0 %942 }
 0x334   :  { %v969_v35 = vsel %vm962_vm11, %v943_v28, inf }
 0x335   :  { %v2939_v40 = vmin.f32 %v2713_v47, %v969_v35 }
 0x337   :  { %1072 = vrot.lane.b32.xlu0 %v2939_v40, %s1257_s26  ;;  %v947_v37 = vpop.permute.xlu0 %946 }
 0x338   :  { %v971_v45 = vsel %vm962_vm11, %v947_v37, inf }
 0x339   :  { %v2946_v58 = vmin.f32 %v2720_v43, %v971_v45 }
 0x33b   :  { %1076 = vrot.lane.b32.xlu0 %v2946_v58, %s1257_s26  ;;  %v951_v42 = vpop.permute.xlu0 %950 }
 0x33c   :  { %v973_v60 = vsel %vm962_vm11, %v951_v42, inf }
 0x33d   :  { %v2953_v47 = vmin.f32 %v2727_v59, %v973_v60 }
 0x33f   :  { %1080 = vrot.lane.b32.xlu0 %v2953_v47, %s1257_s26  ;;  %v955_v23 = vpop.permute.xlu0 %954 }
 0x340   :  { %v975_v33 = vsel %vm962_vm11, %v955_v23, inf }
 0x341   :  { %v2960_v43 = vmin.f32 %v2734_v49, %v975_v33 }
 0x343   :  { %1084 = vrot.lane.b32.xlu0 %v2960_v43, %s1257_s26  ;;  %v959_v32 = vpop.permute.xlu0 %958 }
 0x344   :  { %v977_v41 = vsel %vm962_vm11, %v959_v32, inf }
 0x345   :  { %v2967_v59 = vmin.f32 %v2741_v26, %v977_v41 }
 0x347   :  { %3207 = vst [vmem:[#allocation8_spill] sm:$0xff] %v2967_v59  ;;  %1088 = vrot.lane.b32.xlu0 %v2967_v59, %s1257_s26 }
 0x361   :  { %v998_v20 = vpop.permute.xlu1 %997  ;;  %v996_v45 = vpop.permute.xlu0 %995 }
 0x362   :  { %v1029_v26 = vsel %vm1027_vm12, %v998_v20, inf  ;;  %v1028_v60 = vsel %vm1027_vm12, %v996_v45, inf  ;;  %v2998_v45 = vld [vmem:[%s3195_s0] ss:$0 sm:$0xff] }
 0x363   :  { %v1045_v54 = vmin.f32 %v2751_v0, %v1029_v26  ;;  %v1044_v22 = vmin.f32 %v2754_v39, %v1028_v60  ;;  %vm1141_vm14 = vcmp.gt.f32.partialorder %v2998_v45, %v1579_v3  ;;  %vm1142_vm15 = vcmp.gt.f32.partialorder %v2998_v45, %v1583_v5 }
 0x364   :  { %vm1143_vm0 = vcmp.gt.f32.partialorder %v2998_v45, %v1577_v2  ;;  %vm1144_vm1 = vcmp.gt.f32.partialorder %v2998_v45, %v1581_v4  ;;  %vm1145_vm2 = vcmp.gt.f32.partialorder %v2998_v45, %v1587_v7  ;;  %vm1146_vm3 = vcmp.gt.f32.partialorder %v2998_v45, %v1585_v6 }
 0x365   :  { %v1002_v31 = vpop.permute.xlu1 %1001  ;;  %vm1147_vm4 = vcmp.gt.f32.partialorder %v2998_v45, %v1591_v9  ;;  %vm1148_vm5 = vcmp.gt.f32.partialorder %v2998_v45, %v1589_v8  ;;  %vm1149_vm6 = vcmp.gt.f32.partialorder %v2998_v45, %v1595_v11  ;;  %vm1150_vm7 = vcmp.gt.f32.partialorder %v2998_v45, %v1593_v10 }
 0x366   :  { %vm1151_vm8 = vcmp.gt.f32.partialorder %v2998_v45, %v1599_v13  ;;  %vm1152_vm9 = vcmp.gt.f32.partialorder %v2998_v45, %v1597_v12  ;;  %vm1153_vm10 = vcmp.gt.f32.partialorder %v2998_v45, %v1603_v16  ;;  %v3211_v16 = vld [vmem:[#allocation5_spill] sm:$0xff] }
 0x369   :  { %v1006_v18 = vpop.permute.xlu1 %1005 }
 0x36d   :  { %v2971_v28 = vpop.permute.xlu1 %1009 }
 0x36e   :  { %v1035_v2 = vsel %vm1027_vm12, %v2971_v28, inf }
 0x36f   :  { %v1051_v28 = vmin.f32 %v2777_v19, %v1035_v2 }
 0x371   :  { %v2973_v49 = vpop.permute.xlu1 %1013 }
 0x375   :  { %v2975_v35 = vpop.permute.xlu1 %1017 }
 0x379   :  { %v2977_v37 = vpop.permute.xlu1 %1021 }
 0x37d   :  { %v2980_v42 = vpop.permute.xlu1 %1025 }
 0x381   :  { %v1063_v23 = vpop.permute.xlu1 %1062  ;;  %v1061_v33 = vpop.permute.xlu0 %1060 }
 0x382   :  { %v1094_v32 = vsel %vm1092_vm13, %v1063_v23, inf  ;;  %v1093_v41 = vsel %vm1092_vm13, %v1061_v33, inf }
 0x383   :  { %v1110_v14 = vmin.f32 %v2815_v53, %v1094_v32  ;;  %v1109_v52 = vmin.f32 %v2818_v62, %v1093_v41 }
 0x385   :  { %v1126_v20 = vmin.f32 %v1045_v54, %v1110_v14  ;;  %v1125_v59 = vmin.f32 %v1044_v22, %v1109_v52  ;;  %v1000_v30 = vpop.permute.xlu0 %999  ;;  %v1067_v14 = vpop.permute.xlu1 %1066 }
 0x386   :  { %v1096_v3 = vsel %vm1092_vm13, %v1067_v14, inf  ;;  %v1030_v5 = vsel %vm1027_vm12, %v1000_v30, inf }
 0x387   :  { %v1158_v0 = vsel %vm1142_vm15, %v1126_v20, -inf  ;;  %v1157_v39 = vsel %vm1141_vm14, %v1125_v59, -inf  ;;  %v1031_v59 = vsel %vm1027_vm12, %v1002_v31, inf  ;;  %v1112_v32 = vmin.f32 %v2829_v36, %v1096_v3 }
 0x388   :  { %1175 = vmax.xlane.f32.xlu1 %v1158_v0  ;;  %1173 = vmax.xlane.f32.xlu0 %v1157_v39  ;;  %v1046_v20 = vmin.f32 %v2832_v55, %v1030_v5  ;;  %v1047_v27 = vmin.f32 %v2763_v44, %v1031_v59  ;;  %v1033_v31 = vsel %vm1027_vm12, %v1006_v18, inf  ;;  %vm1205_vm14 = vcmask 7168  }
 0x389   :  { %v1004_v53 = vpop.permute.xlu0 %1003  ;;  %v1071_v52 = vpop.permute.xlu1 %1070  ;;  %v1049_v18 = vmin.f32 %v2770_v48, %v1033_v31 }
 0x38a   :  { %v1098_v0 = vsel %vm1092_vm13, %v1071_v52, inf  ;;  %v1032_v30 = vsel %vm1027_vm12, %v1004_v53, inf  ;;  %v1128_v55 = vmin.f32 %v1047_v27, %v1112_v32 }
 0x38b   :  { %v1114_v5 = vmin.f32 %v2843_v17, %v1098_v0 }
 0x38d   :  { %v1008_v62 = vpop.permute.xlu0 %1007  ;;  %v1075_v60 = vpop.permute.xlu1 %1074 }
 0x38e   :  { %v1100_v44 = vsel %vm1092_vm13, %v1075_v60, inf  ;;  %v1160_v60 = vsel %vm1144_vm1, %v1128_v55, -inf }
 0x38f   :  { %v1116_v48 = vmin.f32 %v2857_v61, %v1100_v44  ;;  %v1037_v61 = vsel %vm1027_vm12, %v2973_v49, inf }
 0x390   :  { %v1053_v49 = vmin.f32 %v2784_v29, %v1037_v61 }
 0x391   :  { %v1012_v54 = vpop.permute.xlu0 %1011  ;;  %v1079_v39 = vpop.permute.xlu1 %1078  ;;  %v1132_v0 = vmin.f32 %v1051_v28, %v1116_v48 }
 0x392   :  { %v1102_v4 = vsel %vm1092_vm13, %v1079_v39, inf }
 0x393   :  { %v1118_v19 = vmin.f32 %v2871_v21, %v1102_v4  ;;  %v1039_v21 = vsel %vm1027_vm12, %v2975_v35, inf  ;;  %v1164_v55 = vsel %vm1148_vm5, %v1132_v0, -inf }
 0x395   :  { %v3004_v22 = vpop.permute.xlu0 %1015  ;;  %v1083_v17 = vpop.permute.xlu1 %1082 }
 0x396   :  { %v1104_v6 = vsel %vm1092_vm13, %v1083_v17, inf }
 0x397   :  { %v1120_v29 = vmin.f32 %v2885_v34, %v1104_v6  ;;  %v1041_v34 = vsel %vm1027_vm12, %v2977_v37, inf }
 0x398   :  { %v1057_v37 = vmin.f32 %v2798_v1, %v1041_v34  ;;  %v1043_v1 = vsel %vm1027_vm12, %v2980_v42, inf  ;;  %v3213_v42 = vld [vmem:[#allocation4_spill] sm:$0xff] }
 0x399   :  { %v3006_v26 = vpop.permute.xlu0 %1019 }
 0x39a   :  { %v1040_v35 = vsel %vm1027_vm12, %v3006_v26, inf }
 0x39d   :  { %v3008_v23 = vpop.permute.xlu0 %1023 }
 0x39e   :  { %v1042_v13 = vsel %vm1027_vm12, %v3008_v23, inf  ;;  %v3208_v23 = vld [vmem:[#allocation6_spill] sm:$0xff] }
 0x3a1   :  { %v1065_v33 = vpop.permute.xlu0 %1064 }
 0x3a2   :  { %v1095_v41 = vsel %vm1092_vm13, %v1065_v33, inf  ;;  %v1034_v33 = vsel %vm1027_vm12, %v1008_v62, inf }
 0x3a3   :  { %v1111_v14 = vmin.f32 %v2925_v46, %v1095_v41  ;;  %v1048_v46 = vmin.f32 %v2846_v38, %v1032_v30  ;;  %v1050_v32 = vmin.f32 %v2860_v63, %v1034_v33  ;;  %v1087_v30 = vpop.permute.xlu1 %1086 }
 0x3a4   :  { %v1106_v8 = vsel %vm1092_vm13, %v1087_v30, inf }
 0x3a5   :  { %v1127_v36 = vmin.f32 %v1046_v20, %v1111_v14  ;;  %v1069_v3 = vpop.permute.xlu0 %1068  ;;  %v1036_v20 = vsel %vm1027_vm12, %v1012_v54, inf }
 0x3a6   :  { %v1097_v52 = vsel %vm1092_vm13, %v1069_v3, inf  ;;  %v1052_v14 = vmin.f32 %v2874_v24, %v1036_v20  ;;  %v1134_v3 = vmin.f32 %v1053_v49, %v1118_v19  ;;  %v3214_v20 = vld [vmem:[#allocation3_spill] sm:$0xff] }
 0x3a7   :  { %v1113_v53 = vmin.f32 %v2932_v56, %v1097_v52  ;;  %v1159_v59 = vsel %vm1143_vm0, %v1127_v36, -inf  ;;  %v1130_v56 = vmin.f32 %v1049_v18, %v1114_v5  ;;  %v1038_v36 = vsel %vm1027_vm12, %v3004_v22, inf }
 0x3a8   :  { %1177 = vmax.xlane.f32.xlu0 %v1159_v59  ;;  %v1054_v5 = vmin.f32 %v2888_v25, %v1038_v36  ;;  %v1091_v25 = vpop.permute.xlu1 %1090  ;;  %v1056_v59 = vmin.f32 %v2902_v50, %v1040_v35  ;;  %v1166_v18 = vsel %vm1150_vm7, %v1134_v3, -inf  ;;  %vm1155_vm12 = vcmp.gt.f32.partialorder %v2998_v45, %v3213_v42 }
 0x3a9   :  { %v1129_v38 = vmin.f32 %v1048_v46, %v1113_v53  ;;  %v1073_v27 = vpop.permute.xlu0 %1072  ;;  %v1162_v39 = vsel %vm1146_vm3, %v1130_v56, -inf  ;;  %v1055_v46 = vmin.f32 %v2791_v57, %v1039_v21  ;;  %v1108_v2 = vsel %vm1092_vm13, %v1091_v25, inf  ;;  %v3209_v56 = vld [vmem:[#allocation7_spill] sm:$0xff] }
 0x3aa   :  { %v1099_v62 = vsel %vm1092_vm13, %v1073_v27, inf  ;;  %v1124_v27 = vmin.f32 %v3208_v23, %v1108_v2  ;;  %v1058_v48 = vmin.f32 %v3209_v56, %v1042_v13 }
 0x3ab   :  { %v1115_v7 = vmin.f32 %v2939_v40, %v1099_v62  ;;  %v1161_v41 = vsel %vm1145_vm2, %v1129_v38, -inf  ;;  %v1136_v57 = vmin.f32 %v1055_v46, %v1120_v29  ;;  %v3210_v62 = vld [vmem:[#allocation8_spill] sm:$0xff] }
 0x3ac   :  { %1179 = vmax.xlane.f32.xlu0 %v1160_v60  ;;  %1181 = vmax.xlane.f32.xlu1 %v1161_v41 }
 0x3ad   :  { %v1131_v63 = vmin.f32 %v1050_v32, %v1115_v7  ;;  %v1077_v40 = vpop.permute.xlu0 %1076  ;;  %v1168_v38 = vsel %vm1152_vm9, %v1136_v57, -inf  ;;  %v1059_v32 = vmin.f32 %v3211_v16, %v1043_v1  ;;  %v3212_v7 = vld [vmem:[#allocation2_spill] sm:$0xff] }
 0x3ae   :  { %v1101_v54 = vsel %vm1092_vm13, %v1077_v40, inf  ;;  %vm1154_vm11 = vcmp.gt.f32.partialorder %v2998_v45, %v3212_v7 }
 0x3af   :  { %v1117_v9 = vmin.f32 %v2946_v58, %v1101_v54  ;;  %v1163_v31 = vsel %vm1147_vm4, %v1131_v63, -inf  ;;  %v1140_v15 = vmin.f32 %v1059_v32, %v1124_v27 }
 0x3b0   :  { %1183 = vmax.xlane.f32.xlu0 %v1162_v39  ;;  %1185 = vmax.xlane.f32.xlu1 %v1163_v31 }
 0x3b1   :  { %v1133_v24 = vmin.f32 %v1052_v14, %v1117_v9  ;;  %v1081_v58 = vpop.permute.xlu0 %1080 }
 0x3b2   :  { %v1103_v22 = vsel %vm1092_vm13, %v1081_v58, inf }
 0x3b3   :  { %v1119_v11 = vmin.f32 %v2953_v47, %v1103_v22  ;;  %v1165_v52 = vsel %vm1149_vm6, %v1133_v24, -inf  ;;  %v1122_v47 = vmin.f32 %v2899_v51, %v1106_v8 }
 0x3b4   :  { %1187 = vmax.xlane.f32.xlu0 %v1164_v55  ;;  %1189 = vmax.xlane.f32.xlu1 %v1165_v52 }
 0x3b5   :  { %v1135_v44 = vmin.f32 %v1054_v5, %v1119_v11  ;;  %v1085_v53 = vpop.permute.xlu0 %1084 }
 0x3b6   :  { %v1105_v26 = vsel %vm1092_vm13, %v1085_v53, inf }
 0x3b7   :  { %v1121_v10 = vmin.f32 %v2960_v43, %v1105_v26  ;;  %v1167_v33 = vsel %vm1151_vm8, %v1135_v44, -inf  ;;  %v1138_v43 = vmin.f32 %v1057_v37, %v1122_v47 }
 0x3b8   :  { %1191 = vmax.xlane.f32.xlu0 %v1166_v18  ;;  %1193 = vmax.xlane.f32.xlu1 %v1167_v33 }
 0x3b9   :  { %v1137_v51 = vmin.f32 %v1056_v59, %v1121_v10  ;;  %v1089_v50 = vpop.permute.xlu0 %1088  ;;  %v1170_v41 = vsel %vm1154_vm11, %v1138_v43, -inf }
 0x3ba   :  { %v1107_v17 = vsel %vm1092_vm13, %v1089_v50, inf  ;;  %vm1156_vm13 = vcmp.gt.f32.partialorder %v2998_v45, %v3214_v20 }
 0x3bb   :  { %v1123_v12 = vmin.f32 %v3210_v62, %v1107_v17  ;;  %v1169_v60 = vsel %vm1153_vm10, %v1137_v51, -inf  ;;  %v1172_v61 = vsel %vm1156_vm13, %v1140_v15, -inf }
 0x3bc   :  { %1195 = vmax.xlane.f32.xlu0 %v1168_v38  ;;  %1197 = vmax.xlane.f32.xlu1 %v1169_v60 }
 0x3bd   :  { %v1139_v4 = vmin.f32 %v1058_v48, %v1123_v12 }
 0x3bf   :  { %v1171_v28 = vsel %vm1155_vm12, %v1139_v4, -inf }
 0x3c0   :  { %1199 = vmax.xlane.f32.xlu0 %v1170_v41  ;;  %1201 = vmax.xlane.f32.xlu1 %v1171_v28 }
 0x3c4   :  { %1203 = vmax.xlane.f32.xlu0 %v1172_v61 }
 0x415   :  { %v1176_v63 = vpop.xlane.xlu1 %1175  ;;  %v1174_v40 = vpop.xlane.xlu0 %1173 }
 0x416   :  { %1207 = vst.msk [vmem:[%s3196_s2 + $0x8] sm:$0xff] %vm1205_vm14, %v1176_v63  ;;  %1206 = vst.msk [vmem:[%s3196_s2] sm:$0xff] %vm1205_vm14, %v1174_v40 }
 0x435   :  { %v1178_v0 = vpop.xlane.xlu0 %1177 }
 0x436   :  { %1208 = vst.msk [vmem:[%s3196_s2 + $0x10] sm:$0xff] %vm1205_vm14, %v1178_v0 }
 0x439   :  { %v1182_v45 = vpop.xlane.xlu1 %1181  ;;  %v1180_v19 = vpop.xlane.xlu0 %1179 }
 0x43a   :  { %1210 = vst.msk [vmem:[%s3196_s2 + $0x20] sm:$0xff] %vm1205_vm14, %v1182_v45  ;;  %1209 = vst.msk [vmem:[%s3196_s2 + $0x18] sm:$0xff] %vm1205_vm14, %v1180_v19 }
 0x43d   :  { %v1186_v54 = vpop.xlane.xlu1 %1185  ;;  %v1184_v39 = vpop.xlane.xlu0 %1183 }
 0x43e   :  { %1212 = vst.msk [vmem:[%s3196_s2 + $0x30] sm:$0xff] %vm1205_vm14, %v1186_v54  ;;  %1211 = vst.msk [vmem:[%s3196_s2 + $0x28] sm:$0xff] %vm1205_vm14, %v1184_v39 }
 0x441   :  { %v1190_v14 = vpop.xlane.xlu1 %1189  ;;  %v1188_v6 = vpop.xlane.xlu0 %1187 }
 0x442   :  { %1214 = vst.msk [vmem:[%s3196_s2 + $0x40] sm:$0xff] %vm1205_vm14, %v1190_v14  ;;  %1213 = vst.msk [vmem:[%s3196_s2 + $0x38] sm:$0xff] %vm1205_vm14, %v1188_v6 }
 0x445   :  { %v1194_v30 = vpop.xlane.xlu1 %1193  ;;  %v1192_v9 = vpop.xlane.xlu0 %1191 }
 0x446   :  { %1216 = vst.msk [vmem:[%s3196_s2 + $0x50] sm:$0xff] %vm1205_vm14, %v1194_v30  ;;  %1215 = vst.msk [vmem:[%s3196_s2 + $0x48] sm:$0xff] %vm1205_vm14, %v1192_v9 }
 0x449   :  { %v1198_v31 = vpop.xlane.xlu1 %1197  ;;  %v1196_v49 = vpop.xlane.xlu0 %1195 }
 0x44a   :  { %1218 = vst.msk [vmem:[%s3196_s2 + $0x60] sm:$0xff] %vm1205_vm14, %v1198_v31  ;;  %1217 = vst.msk [vmem:[%s3196_s2 + $0x58] sm:$0xff] %vm1205_vm14, %v1196_v49 }
 0x44d   :  { %v1202_v36 = vpop.xlane.xlu1 %1201  ;;  %v1200_v21 = vpop.xlane.xlu0 %1199 }
 0x44e   :  { %1220 = vst.msk [vmem:[%s3196_s2 + $0x70] sm:$0xff] %vm1205_vm14, %v1202_v36  ;;  %1219 = vst.msk [vmem:[%s3196_s2 + $0x68] sm:$0xff] %vm1205_vm14, %v1200_v21 }
 0x451   :  { %v1204_v24 = vpop.xlane.xlu0 %1203 }
 0x452   :  { %1221 = vst.msk [vmem:[%s3196_s2 + $0x78] sm:$0xff] %vm1205_vm14, %v1204_v24 }

</bundles_post_ra>
